<compile_context>
chip_gen: v5e
topology: v5e:2x2
jax: 0.10.0
libtpu: 0.0.40
codegen_flags: <defaults>
</compile_context>

<pallas_src>
import numpy as np
import jax
import jax.numpy as jnp
from jax.experimental import pallas as pl
from jax.experimental.pallas import tpu as pltpu

C1 = 6      # conv1 output channels
C2 = 16     # conv2 output channels
NPOS = 100  # conv2 output positions (10x10), parity-major lane order
NCELL = 25  # cells of the 5x5 conv2 window / of one pooled-2 quadrant


# ------------------------------ Pallas kernel -------------------------------

def cnn_fused_kernel(xp_ref, w1_ref, b1_ref, w2_ref, b2_ref,
                     fc1w_ref, fc1b_ref, fc2w_ref, fc2b_ref,
                     fc3w_ref, fc3b_ref, out_ref):
    # xp_ref: (1, 4, 25, 100)  -- for 2x2 pool-window element j, value of every
    # pooled-grid pixel needed by every conv2 output position.
    xa, xb = xp_ref[0, 0], xp_ref[0, 1]
    xc, xd = xp_ref[0, 2], xp_ref[0, 3]
    win_max = jnp.maximum(jnp.maximum(xa, xb), jnp.maximum(xc, xd))  # (25,100)
    win_min = jnp.minimum(jnp.minimum(xa, xb), jnp.minimum(xc, xd))  # (25,100)

    # conv1(1x1)+ReLU+maxpool folded per channel, conv2 accumulated over the 6
    # input channels as (16,25)@(25,100) MXU matmuls (N = 100 lanes).
    acc = jnp.zeros((C2, NPOS), jnp.float32)
    for c in range(C1):
        w1c = w1_ref[c]
        b1c = b1_ref[c]
        # maxpool(relu(w*x + b)) == relu(max(w*max(x), w*min(x)) + b)   (exact)
        pooled_c = jnp.maximum(
            jnp.maximum(w1c * win_max, w1c * win_min) + b1c, 0.0)     # (25,100)
        acc = acc + jnp.dot(w2_ref[c], pooled_c,
                            preferred_element_type=jnp.float32)       # (16,100)
    h2 = jnp.maximum(acc + b2_ref[...], 0.0)                          # (16,100)

    # pool-2: output positions are parity-major (p = j2*25 + cell), so the 2x2
    # max-pool is an elementwise max over four 25-lane blocks.
    quads = [h2[:, j * NCELL:(j + 1) * NCELL] for j in range(4)]
    p2 = jnp.maximum(jnp.maximum(quads[0], quads[1]),
                     jnp.maximum(quads[2], quads[3]))                 # (16,25)

    # flatten (NCHW order) + fc1 as a sum over the 16 conv2 channels.
    h = fc1b_ref[...]                                                 # (1,120)
    for o in range(C2):
        h = h + jnp.dot(p2[o:o + 1, :], fc1w_ref[o],
                        preferred_element_type=jnp.float32)
    h = jnp.maximum(h, 0.0)

    h = jnp.maximum(
        jnp.dot(h, fc2w_ref[...], preferred_element_type=jnp.float32)
        + fc2b_ref[...], 0.0)                                         # (1,84)
    out = (jnp.dot(h, fc3w_ref[...], preferred_element_type=jnp.float32)
           + fc3b_ref[...])                                           # (1,8)
    out_ref[0] = out


# ----------------------------- wrapper / layout ------------------------------

def _patch_indices():
    # Static index maps into the raw 28x28 image.
    j = np.arange(4)                        # 2x2 pool-1 window element
    jh, jw = j // 2, j % 2
    q = np.arange(NCELL)                    # cell of the 5x5 conv2 window
    ph, pw = q // 5, q % 5
    p = np.arange(NPOS)                     # conv2 output position, parity-major
    j2, cell = p // NCELL, p % NCELL
    a, b = cell // 5, cell % 5
    oh = 2 * a + j2 // 2                    # conv2 output row (0..9)
    ow = 2 * b + j2 % 2                     # conv2 output col (0..9)
    rows = 2 * (oh[None, None, :] + ph[None, :, None]) + jh[:, None, None]
    cols = 2 * (ow[None, None, :] + pw[None, :, None]) + jw[:, None, None]
    return rows.astype(np.int32), cols.astype(np.int32)    # each (4,25,100)


def _build_patches(x):
    # x: (B, 1, 28, 28) NCHW -> (B, 4, 25, 100), lane-dense, parity-major.
    B = x.shape[0]
    rows, cols = _patch_indices()
    x2d = x.reshape(B, 28, 28).astype(jnp.float32)
    return x2d[:, rows, cols]


def _prepare_kernel_params(p):
    # Permute PyTorch-layout weights into the kernel's layouts (done once).
    return dict(
        w1=p["conv1_w"].reshape(C1),                                       # (6,)
        b1=p["conv1_b"].reshape(C1),                                       # (6,)
        w2=jnp.transpose(p["conv2_w"].reshape(C2, C1, NCELL), (1, 0, 2)),  # (6,16,25)
        b2=p["conv2_b"].reshape(C2, 1),                                    # (16,1)
        fc1w=jnp.transpose(p["fc1_w"].reshape(120, C2, NCELL), (1, 2, 0)), # (16,25,120)
        fc1b=p["fc1_b"].reshape(1, 120),
        fc2w=jnp.transpose(p["fc2_w"]),                                    # (120,84)
        fc2b=p["fc2_b"].reshape(1, 84),
        fc3w=jnp.transpose(p["fc3_w"]),                                    # (84,8)
        fc3b=p["fc3_b"].reshape(1, 8),
    )


def cnn_forward(x, params):
    B = x.shape[0]
    xp = _build_patches(x)
    kp = _prepare_kernel_params(params)

    def full(arr):
        return pl.BlockSpec(arr.shape, lambda b, _n=arr.ndim: (0,) * _n)

    smem = pl.BlockSpec(memory_space=pltpu.MemorySpace.SMEM)

    out = pl.pallas_call(
        cnn_fused_kernel,
        grid=(B,),
        in_specs=[
            pl.BlockSpec((1, 4, NCELL, NPOS), lambda b: (b, 0, 0, 0)),  # xp
            smem,                 # conv1 weight (6,)
            smem,                 # conv1 bias   (6,)
            full(kp["w2"]), full(kp["b2"]),
            full(kp["fc1w"]), full(kp["fc1b"]),
            full(kp["fc2w"]), full(kp["fc2b"]),
            full(kp["fc3w"]), full(kp["fc3b"]),
        ],
        out_specs=pl.BlockSpec((1, 1, 8), lambda b: (b, 0, 0)),
        out_shape=jax.ShapeDtypeStruct((B, 1, 8), jnp.float32),
        compiler_params=pltpu.CompilerParams(
            dimension_semantics=("parallel",)),
    )(xp, kp["w1"], kp["b1"], kp["w2"], kp["b2"],
      kp["fc1w"], kp["fc1b"], kp["fc2w"], kp["fc2b"],
      kp["fc3w"], kp["fc3b"])
    return out.reshape(B, 8)


# ---------------------- params / pure-JAX reference --------------------------

def init_params(key):
    ks = jax.random.split(key, 10)
    s = 0.1
    return {
        # PyTorch-native layouts.
        "conv1_w": jax.random.normal(ks[0], (6, 1, 1, 1), jnp.float32) * s,
        "conv1_b": jax.random.normal(ks[1], (6,), jnp.float32) * s,
        "conv2_w": jax.random.normal(ks[2], (16, 6, 5, 5), jnp.float32) * s,
        "conv2_b": jax.random.normal(ks[3], (16,), jnp.float32) * s,
        "fc1_w": jax.random.normal(ks[4], (120, 400), jnp.float32) * s,
        "fc1_b": jax.random.normal(ks[5], (120,), jnp.float32) * s,
        "fc2_w": jax.random.normal(ks[6], (84, 120), jnp.float32) * s,
        "fc2_b": jax.random.normal(ks[7], (84,), jnp.float32) * s,
        "fc3_w": jax.random.normal(ks[8], (8, 84), jnp.float32) * s,
        "fc3_b": jax.random.normal(ks[9], (8,), jnp.float32) * s,
    }


def reference_forward(x, p):
    dn = ("NCHW", "OIHW", "NCHW")
    hi = jax.lax.Precision.HIGHEST
    y = jax.lax.conv_general_dilated(x, p["conv1_w"], (1, 1), "VALID",
                                     dimension_numbers=dn, precision=hi)
    y = jax.nn.relu(y + p["conv1_b"].reshape(1, 6, 1, 1))
    y = jax.lax.reduce_window(y, -jnp.inf, jax.lax.max,
                              (1, 1, 2, 2), (1, 1, 2, 2), "VALID")
    y = jax.lax.conv_general_dilated(y, p["conv2_w"], (1, 1), "VALID",
                                     dimension_numbers=dn, precision=hi)
    y = jax.nn.relu(y + p["conv2_b"].reshape(1, 16, 1, 1))
    y = jax.lax.reduce_window(y, -jnp.inf, jax.lax.max,
                              (1, 1, 2, 2), (1, 1, 2, 2), "VALID")
    y = y.reshape(x.shape[0], 400)
    y = jax.nn.relu(y @ p["fc1_w"].T + p["fc1_b"])
    y = jax.nn.relu(y @ p["fc2_w"].T + p["fc2_b"])
    return y @ p["fc3_w"].T + p["fc3_b"]


if __name__ == "__main__":
    key = jax.random.PRNGKey(0)
    kx, kp_key = jax.random.split(key)
    # Spatial size 28x28 with 1 input channel is implied by fc1 = 16*5*5.
    x = jax.random.normal(kx, (2, 1, 28, 28), jnp.float32)
    params = init_params(kp_key)

    out = jax.block_until_ready(jax.jit(cnn_forward)(x, params))
    assert out.shape == (2, 8), out.shape
    assert out.dtype == jnp.float32

    ref = jax.block_until_ready(jax.jit(reference_forward)(x, params))
    np.testing.assert_allclose(np.asarray(out), np.asarray(ref),
                               rtol=2e-2, atol=2e-2)
    print("KERNEL_OK")
</pallas_src>

<mosaic_0001>
module attributes {stable_mosaic.version = 11 : i64} {
  func.func @cnn_fused_kernel(%arg0: i32, %arg1: memref<1x4x25x100xf32, #tpu.memory_space<vmem>>, %arg2: memref<6xf32, #tpu.memory_space<smem>>, %arg3: memref<6xf32, #tpu.memory_space<smem>>, %arg4: memref<6x16x25xf32, #tpu.memory_space<vmem>>, %arg5: memref<16x1xf32, #tpu.memory_space<vmem>>, %arg6: memref<16x25x120xf32, #tpu.memory_space<vmem>>, %arg7: memref<1x120xf32, #tpu.memory_space<vmem>>, %arg8: memref<120x84xf32, #tpu.memory_space<vmem>>, %arg9: memref<1x84xf32, #tpu.memory_space<vmem>>, %arg10: memref<84x8xf32, #tpu.memory_space<vmem>>, %arg11: memref<1x8xf32, #tpu.memory_space<vmem>>, %arg12: memref<1x1x8xf32, #tpu.memory_space<vmem>>) attributes {dimension_semantics = [#tpu.dimension_semantics<parallel>], iteration_bounds = array<i64: 2>, scalar_prefetch = 0 : i64, scratch_operands = 0 : i64, tpu.core_type = #tpu.core_type<tc>, window_params = [{transform_indices = @transform_0, window_bounds = array<i64: 1, 4, 25, 100>}, {transform_indices = @transform_1, window_bounds = array<i64: 6>}, {transform_indices = @transform_2, window_bounds = array<i64: 6>}, {pipeline_mode = #tpu.pipeline_mode<synchronous>, transform_indices = @transform_3, window_bounds = array<i64: 6, 16, 25>}, {pipeline_mode = #tpu.pipeline_mode<synchronous>, transform_indices = @transform_4, window_bounds = array<i64: 16, 1>}, {pipeline_mode = #tpu.pipeline_mode<synchronous>, transform_indices = @transform_5, window_bounds = array<i64: 16, 25, 120>}, {pipeline_mode = #tpu.pipeline_mode<synchronous>, transform_indices = @transform_6, window_bounds = array<i64: 1, 120>}, {pipeline_mode = #tpu.pipeline_mode<synchronous>, transform_indices = @transform_7, window_bounds = array<i64: 120, 84>}, {pipeline_mode = #tpu.pipeline_mode<synchronous>, transform_indices = @transform_8, window_bounds = array<i64: 1, 84>}, {pipeline_mode = #tpu.pipeline_mode<synchronous>, transform_indices = @transform_9, window_bounds = array<i64: 84, 8>}, {pipeline_mode = #tpu.pipeline_mode<synchronous>, transform_indices = @transform_10, window_bounds = array<i64: 1, 8>}, {transform_indices = @transform_11, window_bounds = array<i64: 1, 1, 8>}]} {
    %c0 = arith.constant 0 : index
    %c0_0 = arith.constant 0 : index
    %c0_1 = arith.constant 0 : index
    %c0_2 = arith.constant 0 : index
    %0 = vector.load %arg1[%c0, %c0_0, %c0_1, %c0_2] : memref<1x4x25x100xf32, #tpu.memory_space<vmem>>, vector<1x1x25x100xf32>
    %1 = vector.shape_cast %0 : vector<1x1x25x100xf32> to vector<25x100xf32>
    %c0_3 = arith.constant 0 : index
    %c1 = arith.constant 1 : index
    %c0_4 = arith.constant 0 : index
    %c0_5 = arith.constant 0 : index
    %2 = vector.load %arg1[%c0_3, %c1, %c0_4, %c0_5] : memref<1x4x25x100xf32, #tpu.memory_space<vmem>>, vector<1x1x25x100xf32>
    %3 = vector.shape_cast %2 : vector<1x1x25x100xf32> to vector<25x100xf32>
    %c0_6 = arith.constant 0 : index
    %c2 = arith.constant 2 : index
    %c0_7 = arith.constant 0 : index
    %c0_8 = arith.constant 0 : index
    %4 = vector.load %arg1[%c0_6, %c2, %c0_7, %c0_8] : memref<1x4x25x100xf32, #tpu.memory_space<vmem>>, vector<1x1x25x100xf32>
    %5 = vector.shape_cast %4 : vector<1x1x25x100xf32> to vector<25x100xf32>
    %c0_9 = arith.constant 0 : index
    %c3 = arith.constant 3 : index
    %c0_10 = arith.constant 0 : index
    %c0_11 = arith.constant 0 : index
    %6 = vector.load %arg1[%c0_9, %c3, %c0_10, %c0_11] : memref<1x4x25x100xf32, #tpu.memory_space<vmem>>, vector<1x1x25x100xf32>
    %7 = vector.shape_cast %6 : vector<1x1x25x100xf32> to vector<25x100xf32>
    %8 = arith.maximumf %1, %3 : vector<25x100xf32>
    %9 = arith.maximumf %5, %7 : vector<25x100xf32>
    %10 = arith.maximumf %8, %9 : vector<25x100xf32>
    %11 = arith.minimumf %1, %3 : vector<25x100xf32>
    %12 = arith.minimumf %5, %7 : vector<25x100xf32>
    %13 = arith.minimumf %11, %12 : vector<25x100xf32>
    %cst = arith.constant 0.000000e+00 : f32
    %14 = vector.broadcast %cst : f32 to vector<16x100xf32>
    %c0_12 = arith.constant 0 : index
    %15 = memref.load %arg2[%c0_12] : memref<6xf32, #tpu.memory_space<smem>>
    %c0_13 = arith.constant 0 : index
    %16 = memref.load %arg3[%c0_13] : memref<6xf32, #tpu.memory_space<smem>>
    %17 = vector.broadcast %15 : f32 to vector<25x100xf32>
    %18 = arith.mulf %17, %10 : vector<25x100xf32>
    %19 = vector.broadcast %15 : f32 to vector<25x100xf32>
    %20 = arith.mulf %19, %13 : vector<25x100xf32>
    %21 = arith.maximumf %18, %20 : vector<25x100xf32>
    %22 = vector.broadcast %16 : f32 to vector<25x100xf32>
    %23 = arith.addf %21, %22 : vector<25x100xf32>
    %cst_14 = arith.constant 0.000000e+00 : f32
    %24 = vector.broadcast %cst_14 : f32 to vector<25x100xf32>
    %25 = arith.maximumf %23, %24 : vector<25x100xf32>
    %c0_15 = arith.constant 0 : index
    %c0_16 = arith.constant 0 : index
    %c0_17 = arith.constant 0 : index
    %26 = vector.load %arg4[%c0_15, %c0_16, %c0_17] : memref<6x16x25xf32, #tpu.memory_space<vmem>>, vector<1x16x25xf32>
    %27 = vector.shape_cast %26 : vector<1x16x25xf32> to vector<16x25xf32>
    %cst_18 = arith.constant dense<0.000000e+00> : vector<16x100xf32>
    %28 = tpu.matmul %27, %25, %cst_18 {dimension_numbers = #tpu.dot_dimension_numbers<[1], [0], [0], [1], [0, 0, 1, 1], [], []>} : vector<16x25xf32>, vector<25x100xf32>, vector<16x100xf32> -> vector<16x100xf32>
    %29 = arith.addf %14, %28 : vector<16x100xf32>
    %c1_19 = arith.constant 1 : index
    %30 = memref.load %arg2[%c1_19] : memref<6xf32, #tpu.memory_space<smem>>
    %c1_20 = arith.constant 1 : index
    %31 = memref.load %arg3[%c1_20] : memref<6xf32, #tpu.memory_space<smem>>
    %32 = vector.broadcast %30 : f32 to vector<25x100xf32>
    %33 = arith.mulf %32, %10 : vector<25x100xf32>
    %34 = vector.broadcast %30 : f32 to vector<25x100xf32>
    %35 = arith.mulf %34, %13 : vector<25x100xf32>
    %36 = arith.maximumf %33, %35 : vector<25x100xf32>
    %37 = vector.broadcast %31 : f32 to vector<25x100xf32>
    %38 = arith.addf %36, %37 : vector<25x100xf32>
    %cst_21 = arith.constant 0.000000e+00 : f32
    %39 = vector.broadcast %cst_21 : f32 to vector<25x100xf32>
    %40 = arith.maximumf %38, %39 : vector<25x100xf32>
    %c1_22 = arith.constant 1 : index
    %c0_23 = arith.constant 0 : index
    %c0_24 = arith.constant 0 : index
    %41 = vector.load %arg4[%c1_22, %c0_23, %c0_24] : memref<6x16x25xf32, #tpu.memory_space<vmem>>, vector<1x16x25xf32>
    %42 = vector.shape_cast %41 : vector<1x16x25xf32> to vector<16x25xf32>
    %cst_25 = arith.constant dense<0.000000e+00> : vector<16x100xf32>
    %43 = tpu.matmul %42, %40, %cst_25 {dimension_numbers = #tpu.dot_dimension_numbers<[1], [0], [0], [1], [0, 0, 1, 1], [], []>} : vector<16x25xf32>, vector<25x100xf32>, vector<16x100xf32> -> vector<16x100xf32>
    %44 = arith.addf %29, %43 : vector<16x100xf32>
    %c2_26 = arith.constant 2 : index
    %45 = memref.load %arg2[%c2_26] : memref<6xf32, #tpu.memory_space<smem>>
    %c2_27 = arith.constant 2 : index
    %46 = memref.load %arg3[%c2_27] : memref<6xf32, #tpu.memory_space<smem>>
    %47 = vector.broadcast %45 : f32 to vector<25x100xf32>
    %48 = arith.mulf %47, %10 : vector<25x100xf32>
    %49 = vector.broadcast %45 : f32 to vector<25x100xf32>
    %50 = arith.mulf %49, %13 : vector<25x100xf32>
    %51 = arith.maximumf %48, %50 : vector<25x100xf32>
    %52 = vector.broadcast %46 : f32 to vector<25x100xf32>
    %53 = arith.addf %51, %52 : vector<25x100xf32>
    %cst_28 = arith.constant 0.000000e+00 : f32
    %54 = vector.broadcast %cst_28 : f32 to vector<25x100xf32>
    %55 = arith.maximumf %53, %54 : vector<25x100xf32>
    %c2_29 = arith.constant 2 : index
    %c0_30 = arith.constant 0 : index
    %c0_31 = arith.constant 0 : index
    %56 = vector.load %arg4[%c2_29, %c0_30, %c0_31] : memref<6x16x25xf32, #tpu.memory_space<vmem>>, vector<1x16x25xf32>
    %57 = vector.shape_cast %56 : vector<1x16x25xf32> to vector<16x25xf32>
    %cst_32 = arith.constant dense<0.000000e+00> : vector<16x100xf32>
    %58 = tpu.matmul %57, %55, %cst_32 {dimension_numbers = #tpu.dot_dimension_numbers<[1], [0], [0], [1], [0, 0, 1, 1], [], []>} : vector<16x25xf32>, vector<25x100xf32>, vector<16x100xf32> -> vector<16x100xf32>
    %59 = arith.addf %44, %58 : vector<16x100xf32>
    %c3_33 = arith.constant 3 : index
    %60 = memref.load %arg2[%c3_33] : memref<6xf32, #tpu.memory_space<smem>>
    %c3_34 = arith.constant 3 : index
    %61 = memref.load %arg3[%c3_34] : memref<6xf32, #tpu.memory_space<smem>>
    %62 = vector.broadcast %60 : f32 to vector<25x100xf32>
    %63 = arith.mulf %62, %10 : vector<25x100xf32>
    %64 = vector.broadcast %60 : f32 to vector<25x100xf32>
    %65 = arith.mulf %64, %13 : vector<25x100xf32>
    %66 = arith.maximumf %63, %65 : vector<25x100xf32>
    %67 = vector.broadcast %61 : f32 to vector<25x100xf32>
    %68 = arith.addf %66, %67 : vector<25x100xf32>
    %cst_35 = arith.constant 0.000000e+00 : f32
    %69 = vector.broadcast %cst_35 : f32 to vector<25x100xf32>
    %70 = arith.maximumf %68, %69 : vector<25x100xf32>
    %c3_36 = arith.constant 3 : index
    %c0_37 = arith.constant 0 : index
    %c0_38 = arith.constant 0 : index
    %71 = vector.load %arg4[%c3_36, %c0_37, %c0_38] : memref<6x16x25xf32, #tpu.memory_space<vmem>>, vector<1x16x25xf32>
    %72 = vector.shape_cast %71 : vector<1x16x25xf32> to vector<16x25xf32>
    %cst_39 = arith.constant dense<0.000000e+00> : vector<16x100xf32>
    %73 = tpu.matmul %72, %70, %cst_39 {dimension_numbers = #tpu.dot_dimension_numbers<[1], [0], [0], [1], [0, 0, 1, 1], [], []>} : vector<16x25xf32>, vector<25x100xf32>, vector<16x100xf32> -> vector<16x100xf32>
    %74 = arith.addf %59, %73 : vector<16x100xf32>
    %c4 = arith.constant 4 : index
    %75 = memref.load %arg2[%c4] : memref<6xf32, #tpu.memory_space<smem>>
    %c4_40 = arith.constant 4 : index
    %76 = memref.load %arg3[%c4_40] : memref<6xf32, #tpu.memory_space<smem>>
    %77 = vector.broadcast %75 : f32 to vector<25x100xf32>
    %78 = arith.mulf %77, %10 : vector<25x100xf32>
    %79 = vector.broadcast %75 : f32 to vector<25x100xf32>
    %80 = arith.mulf %79, %13 : vector<25x100xf32>
    %81 = arith.maximumf %78, %80 : vector<25x100xf32>
    %82 = vector.broadcast %76 : f32 to vector<25x100xf32>
    %83 = arith.addf %81, %82 : vector<25x100xf32>
    %cst_41 = arith.constant 0.000000e+00 : f32
    %84 = vector.broadcast %cst_41 : f32 to vector<25x100xf32>
    %85 = arith.maximumf %83, %84 : vector<25x100xf32>
    %c4_42 = arith.constant 4 : index
    %c0_43 = arith.constant 0 : index
    %c0_44 = arith.constant 0 : index
    %86 = vector.load %arg4[%c4_42, %c0_43, %c0_44] : memref<6x16x25xf32, #tpu.memory_space<vmem>>, vector<1x16x25xf32>
    %87 = vector.shape_cast %86 : vector<1x16x25xf32> to vector<16x25xf32>
    %cst_45 = arith.constant dense<0.000000e+00> : vector<16x100xf32>
    %88 = tpu.matmul %87, %85, %cst_45 {dimension_numbers = #tpu.dot_dimension_numbers<[1], [0], [0], [1], [0, 0, 1, 1], [], []>} : vector<16x25xf32>, vector<25x100xf32>, vector<16x100xf32> -> vector<16x100xf32>
    %89 = arith.addf %74, %88 : vector<16x100xf32>
    %c5 = arith.constant 5 : index
    %90 = memref.load %arg2[%c5] : memref<6xf32, #tpu.memory_space<smem>>
    %c5_46 = arith.constant 5 : index
    %91 = memref.load %arg3[%c5_46] : memref<6xf32, #tpu.memory_space<smem>>
    %92 = vector.broadcast %90 : f32 to vector<25x100xf32>
    %93 = arith.mulf %92, %10 : vector<25x100xf32>
    %94 = vector.broadcast %90 : f32 to vector<25x100xf32>
    %95 = arith.mulf %94, %13 : vector<25x100xf32>
    %96 = arith.maximumf %93, %95 : vector<25x100xf32>
    %97 = vector.broadcast %91 : f32 to vector<25x100xf32>
    %98 = arith.addf %96, %97 : vector<25x100xf32>
    %cst_47 = arith.constant 0.000000e+00 : f32
    %99 = vector.broadcast %cst_47 : f32 to vector<25x100xf32>
    %100 = arith.maximumf %98, %99 : vector<25x100xf32>
    %c5_48 = arith.constant 5 : index
    %c0_49 = arith.constant 0 : index
    %c0_50 = arith.constant 0 : index
    %101 = vector.load %arg4[%c5_48, %c0_49, %c0_50] : memref<6x16x25xf32, #tpu.memory_space<vmem>>, vector<1x16x25xf32>
    %102 = vector.shape_cast %101 : vector<1x16x25xf32> to vector<16x25xf32>
    %cst_51 = arith.constant dense<0.000000e+00> : vector<16x100xf32>
    %103 = tpu.matmul %102, %100, %cst_51 {dimension_numbers = #tpu.dot_dimension_numbers<[1], [0], [0], [1], [0, 0, 1, 1], [], []>} : vector<16x25xf32>, vector<25x100xf32>, vector<16x100xf32> -> vector<16x100xf32>
    %104 = arith.addf %89, %103 : vector<16x100xf32>
    %c0_52 = arith.constant 0 : index
    %c0_53 = arith.constant 0 : index
    %105 = vector.load %arg5[%c0_52, %c0_53] : memref<16x1xf32, #tpu.memory_space<vmem>>, vector<16x1xf32>
    %106 = vector.broadcast %105 : vector<16x1xf32> to vector<16x100xf32>
    %107 = arith.addf %104, %106 : vector<16x100xf32>
    %cst_54 = arith.constant 0.000000e+00 : f32
    %108 = vector.broadcast %cst_54 : f32 to vector<16x100xf32>
    %109 = arith.maximumf %107, %108 : vector<16x100xf32>
    %110 = vector.extract_strided_slice %109 {offsets = [0, 0], sizes = [16, 25], strides = [1, 1]} : vector<16x100xf32> to vector<16x25xf32>
    %111 = vector.extract_strided_slice %109 {offsets = [0, 25], sizes = [16, 25], strides = [1, 1]} : vector<16x100xf32> to vector<16x25xf32>
    %112 = vector.extract_strided_slice %109 {offsets = [0, 50], sizes = [16, 25], strides = [1, 1]} : vector<16x100xf32> to vector<16x25xf32>
    %113 = vector.extract_strided_slice %109 {offsets = [0, 75], sizes = [16, 25], strides = [1, 1]} : vector<16x100xf32> to vector<16x25xf32>
    %114 = arith.maximumf %110, %111 : vector<16x25xf32>
    %115 = arith.maximumf %112, %113 : vector<16x25xf32>
    %116 = arith.maximumf %114, %115 : vector<16x25xf32>
    %c0_55 = arith.constant 0 : index
    %c0_56 = arith.constant 0 : index
    %117 = vector.load %arg7[%c0_55, %c0_56] : memref<1x120xf32, #tpu.memory_space<vmem>>, vector<1x120xf32>
    %118 = vector.extract_strided_slice %116 {offsets = [0, 0], sizes = [1, 25], strides = [1, 1]} : vector<16x25xf32> to vector<1x25xf32>
    %c0_57 = arith.constant 0 : index
    %c0_58 = arith.constant 0 : index
    %c0_59 = arith.constant 0 : index
    %119 = vector.load %arg6[%c0_57, %c0_58, %c0_59] : memref<16x25x120xf32, #tpu.memory_space<vmem>>, vector<1x25x120xf32>
    %120 = vector.shape_cast %119 : vector<1x25x120xf32> to vector<25x120xf32>
    %cst_60 = arith.constant dense<0.000000e+00> : vector<1x120xf32>
    %121 = tpu.matmul %118, %120, %cst_60 {dimension_numbers = #tpu.dot_dimension_numbers<[1], [0], [0], [1], [0, 0, 1, 1], [], []>} : vector<1x25xf32>, vector<25x120xf32>, vector<1x120xf32> -> vector<1x120xf32>
    %122 = arith.addf %117, %121 : vector<1x120xf32>
    %123 = vector.extract_strided_slice %116 {offsets = [1, 0], sizes = [1, 25], strides = [1, 1]} : vector<16x25xf32> to vector<1x25xf32>
    %c1_61 = arith.constant 1 : index
    %c0_62 = arith.constant 0 : index
    %c0_63 = arith.constant 0 : index
    %124 = vector.load %arg6[%c1_61, %c0_62, %c0_63] : memref<16x25x120xf32, #tpu.memory_space<vmem>>, vector<1x25x120xf32>
    %125 = vector.shape_cast %124 : vector<1x25x120xf32> to vector<25x120xf32>
    %cst_64 = arith.constant dense<0.000000e+00> : vector<1x120xf32>
    %126 = tpu.matmul %123, %125, %cst_64 {dimension_numbers = #tpu.dot_dimension_numbers<[1], [0], [0], [1], [0, 0, 1, 1], [], []>} : vector<1x25xf32>, vector<25x120xf32>, vector<1x120xf32> -> vector<1x120xf32>
    %127 = arith.addf %122, %126 : vector<1x120xf32>
    %128 = vector.extract_strided_slice %116 {offsets = [2, 0], sizes = [1, 25], strides = [1, 1]} : vector<16x25xf32> to vector<1x25xf32>
    %c2_65 = arith.constant 2 : index
    %c0_66 = arith.constant 0 : index
    %c0_67 = arith.constant 0 : index
    %129 = vector.load %arg6[%c2_65, %c0_66, %c0_67] : memref<16x25x120xf32, #tpu.memory_space<vmem>>, vector<1x25x120xf32>
    %130 = vector.shape_cast %129 : vector<1x25x120xf32> to vector<25x120xf32>
    %cst_68 = arith.constant dense<0.000000e+00> : vector<1x120xf32>
    %131 = tpu.matmul %128, %130, %cst_68 {dimension_numbers = #tpu.dot_dimension_numbers<[1], [0], [0], [1], [0, 0, 1, 1], [], []>} : vector<1x25xf32>, vector<25x120xf32>, vector<1x120xf32> -> vector<1x120xf32>
    %132 = arith.addf %127, %131 : vector<1x120xf32>
    %133 = vector.extract_strided_slice %116 {offsets = [3, 0], sizes = [1, 25], strides = [1, 1]} : vector<16x25xf32> to vector<1x25xf32>
    %c3_69 = arith.constant 3 : index
    %c0_70 = arith.constant 0 : index
    %c0_71 = arith.constant 0 : index
    %134 = vector.load %arg6[%c3_69, %c0_70, %c0_71] : memref<16x25x120xf32, #tpu.memory_space<vmem>>, vector<1x25x120xf32>
    %135 = vector.shape_cast %134 : vector<1x25x120xf32> to vector<25x120xf32>
    %cst_72 = arith.constant dense<0.000000e+00> : vector<1x120xf32>
    %136 = tpu.matmul %133, %135, %cst_72 {dimension_numbers = #tpu.dot_dimension_numbers<[1], [0], [0], [1], [0, 0, 1, 1], [], []>} : vector<1x25xf32>, vector<25x120xf32>, vector<1x120xf32> -> vector<1x120xf32>
    %137 = arith.addf %132, %136 : vector<1x120xf32>
    %138 = vector.extract_strided_slice %116 {offsets = [4, 0], sizes = [1, 25], strides = [1, 1]} : vector<16x25xf32> to vector<1x25xf32>
    %c4_73 = arith.constant 4 : index
    %c0_74 = arith.constant 0 : index
    %c0_75 = arith.constant 0 : index
    %139 = vector.load %arg6[%c4_73, %c0_74, %c0_75] : memref<16x25x120xf32, #tpu.memory_space<vmem>>, vector<1x25x120xf32>
    %140 = vector.shape_cast %139 : vector<1x25x120xf32> to vector<25x120xf32>
    %cst_76 = arith.constant dense<0.000000e+00> : vector<1x120xf32>
    %141 = tpu.matmul %138, %140, %cst_76 {dimension_numbers = #tpu.dot_dimension_numbers<[1], [0], [0], [1], [0, 0, 1, 1], [], []>} : vector<1x25xf32>, vector<25x120xf32>, vector<1x120xf32> -> vector<1x120xf32>
    %142 = arith.addf %137, %141 : vector<1x120xf32>
    %143 = vector.extract_strided_slice %116 {offsets = [5, 0], sizes = [1, 25], strides = [1, 1]} : vector<16x25xf32> to vector<1x25xf32>
    %c5_77 = arith.constant 5 : index
    %c0_78 = arith.constant 0 : index
    %c0_79 = arith.constant 0 : index
    %144 = vector.load %arg6[%c5_77, %c0_78, %c0_79] : memref<16x25x120xf32, #tpu.memory_space<vmem>>, vector<1x25x120xf32>
    %145 = vector.shape_cast %144 : vector<1x25x120xf32> to vector<25x120xf32>
    %cst_80 = arith.constant dense<0.000000e+00> : vector<1x120xf32>
    %146 = tpu.matmul %143, %145, %cst_80 {dimension_numbers = #tpu.dot_dimension_numbers<[1], [0], [0], [1], [0, 0, 1, 1], [], []>} : vector<1x25xf32>, vector<25x120xf32>, vector<1x120xf32> -> vector<1x120xf32>
    %147 = arith.addf %142, %146 : vector<1x120xf32>
    %148 = vector.extract_strided_slice %116 {offsets = [6, 0], sizes = [1, 25], strides = [1, 1]} : vector<16x25xf32> to vector<1x25xf32>
    %c6 = arith.constant 6 : index
    %c0_81 = arith.constant 0 : index
    %c0_82 = arith.constant 0 : index
    %149 = vector.load %arg6[%c6, %c0_81, %c0_82] : memref<16x25x120xf32, #tpu.memory_space<vmem>>, vector<1x25x120xf32>
    %150 = vector.shape_cast %149 : vector<1x25x120xf32> to vector<25x120xf32>
    %cst_83 = arith.constant dense<0.000000e+00> : vector<1x120xf32>
    %151 = tpu.matmul %148, %150, %cst_83 {dimension_numbers = #tpu.dot_dimension_numbers<[1], [0], [0], [1], [0, 0, 1, 1], [], []>} : vector<1x25xf32>, vector<25x120xf32>, vector<1x120xf32> -> vector<1x120xf32>
    %152 = arith.addf %147, %151 : vector<1x120xf32>
    %153 = vector.extract_strided_slice %116 {offsets = [7, 0], sizes = [1, 25], strides = [1, 1]} : vector<16x25xf32> to vector<1x25xf32>
    %c7 = arith.constant 7 : index
    %c0_84 = arith.constant 0 : index
    %c0_85 = arith.constant 0 : index
    %154 = vector.load %arg6[%c7, %c0_84, %c0_85] : memref<16x25x120xf32, #tpu.memory_space<vmem>>, vector<1x25x120xf32>
    %155 = vector.shape_cast %154 : vector<1x25x120xf32> to vector<25x120xf32>
    %cst_86 = arith.constant dense<0.000000e+00> : vector<1x120xf32>
    %156 = tpu.matmul %153, %155, %cst_86 {dimension_numbers = #tpu.dot_dimension_numbers<[1], [0], [0], [1], [0, 0, 1, 1], [], []>} : vector<1x25xf32>, vector<25x120xf32>, vector<1x120xf32> -> vector<1x120xf32>
    %157 = arith.addf %152, %156 : vector<1x120xf32>
    %158 = vector.extract_strided_slice %116 {offsets = [8, 0], sizes = [1, 25], strides = [1, 1]} : vector<16x25xf32> to vector<1x25xf32>
    %c8 = arith.constant 8 : index
    %c0_87 = arith.constant 0 : index
    %c0_88 = arith.constant 0 : index
    %159 = vector.load %arg6[%c8, %c0_87, %c0_88] : memref<16x25x120xf32, #tpu.memory_space<vmem>>, vector<1x25x120xf32>
    %160 = vector.shape_cast %159 : vector<1x25x120xf32> to vector<25x120xf32>
    %cst_89 = arith.constant dense<0.000000e+00> : vector<1x120xf32>
    %161 = tpu.matmul %158, %160, %cst_89 {dimension_numbers = #tpu.dot_dimension_numbers<[1], [0], [0], [1], [0, 0, 1, 1], [], []>} : vector<1x25xf32>, vector<25x120xf32>, vector<1x120xf32> -> vector<1x120xf32>
    %162 = arith.addf %157, %161 : vector<1x120xf32>
    %163 = vector.extract_strided_slice %116 {offsets = [9, 0], sizes = [1, 25], strides = [1, 1]} : vector<16x25xf32> to vector<1x25xf32>
    %c9 = arith.constant 9 : index
    %c0_90 = arith.constant 0 : index
    %c0_91 = arith.constant 0 : index
    %164 = vector.load %arg6[%c9, %c0_90, %c0_91] : memref<16x25x120xf32, #tpu.memory_space<vmem>>, vector<1x25x120xf32>
    %165 = vector.shape_cast %164 : vector<1x25x120xf32> to vector<25x120xf32>
    %cst_92 = arith.constant dense<0.000000e+00> : vector<1x120xf32>
    %166 = tpu.matmul %163, %165, %cst_92 {dimension_numbers = #tpu.dot_dimension_numbers<[1], [0], [0], [1], [0, 0, 1, 1], [], []>} : vector<1x25xf32>, vector<25x120xf32>, vector<1x120xf32> -> vector<1x120xf32>
    %167 = arith.addf %162, %166 : vector<1x120xf32>
    %168 = vector.extract_strided_slice %116 {offsets = [10, 0], sizes = [1, 25], strides = [1, 1]} : vector<16x25xf32> to vector<1x25xf32>
    %c10 = arith.constant 10 : index
    %c0_93 = arith.constant 0 : index
    %c0_94 = arith.constant 0 : index
    %169 = vector.load %arg6[%c10, %c0_93, %c0_94] : memref<16x25x120xf32, #tpu.memory_space<vmem>>, vector<1x25x120xf32>
    %170 = vector.shape_cast %169 : vector<1x25x120xf32> to vector<25x120xf32>
    %cst_95 = arith.constant dense<0.000000e+00> : vector<1x120xf32>
    %171 = tpu.matmul %168, %170, %cst_95 {dimension_numbers = #tpu.dot_dimension_numbers<[1], [0], [0], [1], [0, 0, 1, 1], [], []>} : vector<1x25xf32>, vector<25x120xf32>, vector<1x120xf32> -> vector<1x120xf32>
    %172 = arith.addf %167, %171 : vector<1x120xf32>
    %173 = vector.extract_strided_slice %116 {offsets = [11, 0], sizes = [1, 25], strides = [1, 1]} : vector<16x25xf32> to vector<1x25xf32>
    %c11 = arith.constant 11 : index
    %c0_96 = arith.constant 0 : index
    %c0_97 = arith.constant 0 : index
    %174 = vector.load %arg6[%c11, %c0_96, %c0_97] : memref<16x25x120xf32, #tpu.memory_space<vmem>>, vector<1x25x120xf32>
    %175 = vector.shape_cast %174 : vector<1x25x120xf32> to vector<25x120xf32>
    %cst_98 = arith.constant dense<0.000000e+00> : vector<1x120xf32>
    %176 = tpu.matmul %173, %175, %cst_98 {dimension_numbers = #tpu.dot_dimension_numbers<[1], [0], [0], [1], [0, 0, 1, 1], [], []>} : vector<1x25xf32>, vector<25x120xf32>, vector<1x120xf32> -> vector<1x120xf32>
    %177 = arith.addf %172, %176 : vector<1x120xf32>
    %178 = vector.extract_strided_slice %116 {offsets = [12, 0], sizes = [1, 25], strides = [1, 1]} : vector<16x25xf32> to vector<1x25xf32>
    %c12 = arith.constant 12 : index
    %c0_99 = arith.constant 0 : index
    %c0_100 = arith.constant 0 : index
    %179 = vector.load %arg6[%c12, %c0_99, %c0_100] : memref<16x25x120xf32, #tpu.memory_space<vmem>>, vector<1x25x120xf32>
    %180 = vector.shape_cast %179 : vector<1x25x120xf32> to vector<25x120xf32>
    %cst_101 = arith.constant dense<0.000000e+00> : vector<1x120xf32>
    %181 = tpu.matmul %178, %180, %cst_101 {dimension_numbers = #tpu.dot_dimension_numbers<[1], [0], [0], [1], [0, 0, 1, 1], [], []>} : vector<1x25xf32>, vector<25x120xf32>, vector<1x120xf32> -> vector<1x120xf32>
    %182 = arith.addf %177, %181 : vector<1x120xf32>
    %183 = vector.extract_strided_slice %116 {offsets = [13, 0], sizes = [1, 25], strides = [1, 1]} : vector<16x25xf32> to vector<1x25xf32>
    %c13 = arith.constant 13 : index
    %c0_102 = arith.constant 0 : index
    %c0_103 = arith.constant 0 : index
    %184 = vector.load %arg6[%c13, %c0_102, %c0_103] : memref<16x25x120xf32, #tpu.memory_space<vmem>>, vector<1x25x120xf32>
    %185 = vector.shape_cast %184 : vector<1x25x120xf32> to vector<25x120xf32>
    %cst_104 = arith.constant dense<0.000000e+00> : vector<1x120xf32>
    %186 = tpu.matmul %183, %185, %cst_104 {dimension_numbers = #tpu.dot_dimension_numbers<[1], [0], [0], [1], [0, 0, 1, 1], [], []>} : vector<1x25xf32>, vector<25x120xf32>, vector<1x120xf32> -> vector<1x120xf32>
    %187 = arith.addf %182, %186 : vector<1x120xf32>
    %188 = vector.extract_strided_slice %116 {offsets = [14, 0], sizes = [1, 25], strides = [1, 1]} : vector<16x25xf32> to vector<1x25xf32>
    %c14 = arith.constant 14 : index
    %c0_105 = arith.constant 0 : index
    %c0_106 = arith.constant 0 : index
    %189 = vector.load %arg6[%c14, %c0_105, %c0_106] : memref<16x25x120xf32, #tpu.memory_space<vmem>>, vector<1x25x120xf32>
    %190 = vector.shape_cast %189 : vector<1x25x120xf32> to vector<25x120xf32>
    %cst_107 = arith.constant dense<0.000000e+00> : vector<1x120xf32>
    %191 = tpu.matmul %188, %190, %cst_107 {dimension_numbers = #tpu.dot_dimension_numbers<[1], [0], [0], [1], [0, 0, 1, 1], [], []>} : vector<1x25xf32>, vector<25x120xf32>, vector<1x120xf32> -> vector<1x120xf32>
    %192 = arith.addf %187, %191 : vector<1x120xf32>
    %193 = vector.extract_strided_slice %116 {offsets = [15, 0], sizes = [1, 25], strides = [1, 1]} : vector<16x25xf32> to vector<1x25xf32>
    %c15 = arith.constant 15 : index
    %c0_108 = arith.constant 0 : index
    %c0_109 = arith.constant 0 : index
    %194 = vector.load %arg6[%c15, %c0_108, %c0_109] : memref<16x25x120xf32, #tpu.memory_space<vmem>>, vector<1x25x120xf32>
    %195 = vector.shape_cast %194 : vector<1x25x120xf32> to vector<25x120xf32>
    %cst_110 = arith.constant dense<0.000000e+00> : vector<1x120xf32>
    %196 = tpu.matmul %193, %195, %cst_110 {dimension_numbers = #tpu.dot_dimension_numbers<[1], [0], [0], [1], [0, 0, 1, 1], [], []>} : vector<1x25xf32>, vector<25x120xf32>, vector<1x120xf32> -> vector<1x120xf32>
    %197 = arith.addf %192, %196 : vector<1x120xf32>
    %cst_111 = arith.constant 0.000000e+00 : f32
    %198 = vector.broadcast %cst_111 : f32 to vector<1x120xf32>
    %199 = arith.maximumf %197, %198 : vector<1x120xf32>
    %c0_112 = arith.constant 0 : index
    %c0_113 = arith.constant 0 : index
    %200 = vector.load %arg8[%c0_112, %c0_113] : memref<120x84xf32, #tpu.memory_space<vmem>>, vector<120x84xf32>
    %cst_114 = arith.constant dense<0.000000e+00> : vector<1x84xf32>
    %201 = tpu.matmul %199, %200, %cst_114 {dimension_numbers = #tpu.dot_dimension_numbers<[1], [0], [0], [1], [0, 0, 1, 1], [], []>} : vector<1x120xf32>, vector<120x84xf32>, vector<1x84xf32> -> vector<1x84xf32>
    %c0_115 = arith.constant 0 : index
    %c0_116 = arith.constant 0 : index
    %202 = vector.load %arg9[%c0_115, %c0_116] : memref<1x84xf32, #tpu.memory_space<vmem>>, vector<1x84xf32>
    %203 = arith.addf %201, %202 : vector<1x84xf32>
    %cst_117 = arith.constant 0.000000e+00 : f32
    %204 = vector.broadcast %cst_117 : f32 to vector<1x84xf32>
    %205 = arith.maximumf %203, %204 : vector<1x84xf32>
    %c0_118 = arith.constant 0 : index
    %c0_119 = arith.constant 0 : index
    %206 = vector.load %arg10[%c0_118, %c0_119] : memref<84x8xf32, #tpu.memory_space<vmem>>, vector<84x8xf32>
    %cst_120 = arith.constant dense<0.000000e+00> : vector<1x8xf32>
    %207 = tpu.matmul %205, %206, %cst_120 {dimension_numbers = #tpu.dot_dimension_numbers<[1], [0], [0], [1], [0, 0, 1, 1], [], []>} : vector<1x84xf32>, vector<84x8xf32>, vector<1x8xf32> -> vector<1x8xf32>
    %c0_121 = arith.constant 0 : index
    %c0_122 = arith.constant 0 : index
    %208 = vector.load %arg11[%c0_121, %c0_122] : memref<1x8xf32, #tpu.memory_space<vmem>>, vector<1x8xf32>
    %209 = arith.addf %207, %208 : vector<1x8xf32>
    %c0_123 = arith.constant 0 : index
    %c0_124 = arith.constant 0 : index
    %c0_125 = arith.constant 0 : index
    %210 = vector.load %arg12[%c0_123, %c0_124, %c0_125] : memref<1x1x8xf32, #tpu.memory_space<vmem>>, vector<1x1x8xf32>
    %211 = vector.shape_cast %210 : vector<1x1x8xf32> to vector<1x8xf32>
    %212 = vector.shape_cast %209 : vector<1x8xf32> to vector<1x1x8xf32>
    tpu.vector_store %arg12[%c0_123, %c0_124, %c0_125], %212 {strides = array<i32>} : memref<1x1x8xf32, #tpu.memory_space<vmem>>, vector<1x1x8xf32>,
    return
  }
  func.func @transform_0(%arg0: i32) -> (i32, i32, i32, i32) {
    %c0_i32 = arith.constant 0 : i32
    %c0_i32_0 = arith.constant 0 : i32
    %c0_i32_1 = arith.constant 0 : i32
    %c0_i32_2 = arith.constant 0 : i32
    return %arg0, %c0_i32, %c0_i32_0, %c0_i32_1 : i32, i32, i32, i32
  }
  func.func @transform_1(%arg0: i32) -> i32 {
    %c0_i32 = arith.constant 0 : i32
    %c0_i32_0 = arith.constant 0 : i32
    return %c0_i32 : i32
  }
  func.func @transform_2(%arg0: i32) -> i32 {
    %c0_i32 = arith.constant 0 : i32
    %c0_i32_0 = arith.constant 0 : i32
    return %c0_i32 : i32
  }
  func.func @transform_3(%arg0: i32) -> (i32, i32, i32) {
    %c0_i32 = arith.constant 0 : i32
    %c0_i32_0 = arith.constant 0 : i32
    %c0_i32_1 = arith.constant 0 : i32
    %c0_i32_2 = arith.constant 0 : i32
    return %c0_i32, %c0_i32_0, %c0_i32_1 : i32, i32, i32
  }
  func.func @transform_4(%arg0: i32) -> (i32, i32) {
    %c0_i32 = arith.constant 0 : i32
    %c0_i32_0 = arith.constant 0 : i32
    %c0_i32_1 = arith.constant 0 : i32
    return %c0_i32, %c0_i32_0 : i32, i32
  }
  func.func @transform_5(%arg0: i32) -> (i32, i32, i32) {
    %c0_i32 = arith.constant 0 : i32
    %c0_i32_0 = arith.constant 0 : i32
    %c0_i32_1 = arith.constant 0 : i32
    %c0_i32_2 = arith.constant 0 : i32
    return %c0_i32, %c0_i32_0, %c0_i32_1 : i32, i32, i32
  }
  func.func @transform_6(%arg0: i32) -> (i32, i32) {
    %c0_i32 = arith.constant 0 : i32
    %c0_i32_0 = arith.constant 0 : i32
    %c0_i32_1 = arith.constant 0 : i32
    return %c0_i32, %c0_i32_0 : i32, i32
  }
  func.func @transform_7(%arg0: i32) -> (i32, i32) {
    %c0_i32 = arith.constant 0 : i32
    %c0_i32_0 = arith.constant 0 : i32
    %c0_i32_1 = arith.constant 0 : i32
    return %c0_i32, %c0_i32_0 : i32, i32
  }
  func.func @transform_8(%arg0: i32) -> (i32, i32) {
    %c0_i32 = arith.constant 0 : i32
    %c0_i32_0 = arith.constant 0 : i32
    %c0_i32_1 = arith.constant 0 : i32
    return %c0_i32, %c0_i32_0 : i32, i32
  }
  func.func @transform_9(%arg0: i32) -> (i32, i32) {
    %c0_i32 = arith.constant 0 : i32
    %c0_i32_0 = arith.constant 0 : i32
    %c0_i32_1 = arith.constant 0 : i32
    return %c0_i32, %c0_i32_0 : i32, i32
  }
  func.func @transform_10(%arg0: i32) -> (i32, i32) {
    %c0_i32 = arith.constant 0 : i32
    %c0_i32_0 = arith.constant 0 : i32
    %c0_i32_1 = arith.constant 0 : i32
    return %c0_i32, %c0_i32_0 : i32, i32
  }
  func.func @transform_11(%arg0: i32) -> (i32, i32, i32) {
    %c0_i32 = arith.constant 0 : i32
    %c0_i32_0 = arith.constant 0 : i32
    %c0_i32_1 = arith.constant 0 : i32
    return %arg0, %c0_i32, %c0_i32_0 : i32, i32, i32
  }
}

</mosaic_0001>

<bundles_post_ra>
// kernel: cnn_forward.1
= control target key start
LH: loop header
LB: loop body
LE: loop exit
PB: predicated region body
PF: predicated region fallthrough
CT: control target
= control target key end

     0   :  { %s2591_s0 = inlined_call_operand.vmem [shape: f32[2,4,25,100], index: 0, kind: input, shape index: {}]   ;;  %s2592_s1 = inlined_call_operand.vmem [shape: f32[6], index: 1, kind: input, shape index: {}]   ;;  %s2593_s2 = inlined_call_operand.vmem [shape: f32[6], index: 2, kind: input, shape index: {}]   ;;  %s2594_s3 = inlined_call_operand.vmem [shape: f32[6,16,25], index: 3, kind: input, shape index: {}]   ;;  %s2595_s4 = inlined_call_operand.vmem [shape: f32[16,1], index: 4, kind: input, shape index: {}]   ;;  %s2596_s5 = inlined_call_operand.vmem [shape: f32[16,25,120], index: 5, kind: input, shape index: {}]   ;;  %s2597_s6 = inlined_call_operand.vmem [shape: f32[1,120], index: 6, kind: input, shape index: {}]   ;;  %s2598_s7 = inlined_call_operand.vmem [shape: f32[120,84], index: 7, kind: input, shape index: {}]   ;;  %s2599_s8 = inlined_call_operand.vmem [shape: f32[1,84], index: 8, kind: input, shape index: {}]   ;;  %s2600_s9 = inlined_call_operand.vmem [shape: f32[84,8], index: 9, kind: input, shape index: {}]   ;;  %s2601_s10 = inlined_call_operand.vmem [shape: f32[1,8], index: 10, kind: input, shape index: {}]   ;;  %s2602_s11 = inlined_call_operand.hbm [shape: f32[2,1,8], index: 11, kind: output, shape index: {}]  }
   0x1   :  { %2603 = sst [smem:[#allocation11_spill]] %s2591_s0 }
   0x2   :  { %2604 = sst [smem:[#allocation12_spill]] %s2592_s1 }
   0x3   :  { %16 = vsyncpa [#allocation4], 0 }
   0x4   :  { %17 = vsyncpa [#allocation6], 0 }
   0x5   :  { %18 = vsyncpa [#allocation3], 0 }
   0x6   :  { %20 = vsyncpa [#allocation3 + $0x1], 0  ;;  %s1932_s17 = smov 0   ;;  %s1934_s18 = smov 0  }
   0x7   :  { %s1936_s19 = smov 0   ;;  %s1938_s20 = smov 0  }
   0x8 LB: > { %s1953_s21 = sadd.s32 4294967295, %s1865_s20   ;;  %s1539_s22 = sadd.s32 4294967294, %s1865_s20   ;;  %s1865_s20 = sphi %s1938_s20, %s2612_s20   ;;  %s1861_s19 = sphi %s1936_s19, %s2611_s19   ;;  %s1857_s18 = sphi %s1934_s18, %s2610_s18   ;;  %s1853_s17 = sphi %s1932_s17, %s2609_s17  }
   0x9   : > { %s1957_s23 = sadd.s32 1, %s1865_s20   ;;  %s269_s24 = sadd.s32 1, %s1861_s19 }
   0xa   : > { %s266_s25 = ssub.s32 %s1865_s20, %s1957_s23  ;;  %p279_p0 = scmp.ne.s32.totalorder %s1861_s19, %s1857_s18 }
   0xb   : > { %p267_p1 = scmp.eq.s32.totalorder %s266_s25, 0  ;;  %p280_p2 = scmp.eq.s32.totalorder %s1953_s21, 1 }
   0xc   : > { %p285_p3 = scmp.ne.s32.totalorder %s1857_s18, %s1853_s17  ;;  %p286_p4 = scmp.eq.s32.totalorder %s1539_s22, 1 }
   0xd   : > { %s1968_s26 = scalar_select %p267_p1, %s1861_s19, %s269_s24  }
   0xe   : > { %p1970_p5 = por %p280_p2, %p279_p0  ;;  %p1974_p6 = por %p286_p4, %p285_p3 }
   0xf   : > { %p1540_p7 = scmp.ge.s32.totalorder %s1865_s20, 1  ;;  %p293_p8 = scmp.lt.s32.totalorder %s1865_s20, 3 }
  0x10   : > { %p1722_p9 = scmp.eq.s32.totalorder %s1953_s21, 0  ;;  %s2607_s1 = sld [smem:[#allocation12_spill]] }
  0x11   : > { %p294_p10 = pnand %p1540_p7, %p293_p8  ;;  %s315_s15 = sshll.u32 %s2593_s2, 4  ;;  %s316_s15 = int_to_ptr.vmem [resolvable:$true] %s315_s15 }
  0x12   : > { %s1867_s16 = smov [#allocation2]   ;;  %s1868_s22 = smov [#allocation5]  }
  0x13   : > { %p1711_p11 = pneg %p294_p10 }
  0x14   : > { %360 = sbr.rel (%p294_p10) target bundleno = 866 (0x362), region = 64 }
  0x15   : > { %p1712_p12 = pnand %p1722_p9, %p1711_p11 }
  0x16   : > { %s305_s12 = sshll.u32 %s2607_s1, 4  ;;  %s306_s12 = int_to_ptr.vmem [resolvable:$true] %s305_s12 }
  0x17   : > { %1714 = dma.vmem_to_smem (!%p1712_p12), %s306_s12, 16, %s1867_s16, [#allocation4]  }
  0x18   : > { %1717 = dma.vmem_to_smem (!%p1712_p12), %s316_s15, 16, %s1868_s22, [#allocation6]  }
  0x19   : > { %1840 = dma.done.wait (%p1722_p9), [#allocation4], 16  }
  0x1a   : > { %1842 = vsyncadd (%p1722_p9), [#allocation4], 4294967280 }
  0x1b   : > { %1844 = dma.done.wait (%p1722_p9), [#allocation6], 16  }
  0x1c   : > { %1846 = vsyncadd (%p1722_p9), [#allocation6], 4294967280 }
  0x1d   : > { %372 = sfence }
  0x1e   : > { %p406_p13 = scmp.lt.s32.totalorder %s1953_s21, 1  ;;  %s1561_s24 = sld [smem:[#allocation2 + $0x1]]  ;;  %vm514_vm0 = vcmask 1040384   ;;  %vm507_vm1 = vcmask 203776   ;;  %vm1423_vm2 = vcmask 1043456   ;;  %vm1382_vm3 = vcmask 982016  }
  0x1f   : > { %s1562_s25 = sld [smem:[#allocation5 + $0x1]]  ;;  %s1870_s13 = smov 103   ;;  %vm1419_vm4 = vcmask 687104   ;;  %vm1447_vm5 = vcmask 57344  }
  0x20   : > { %s407_s29 = scalar_select %p406_p13, %s1953_s21, 1 }
  0x21   : > { %s454_s30 = sld [smem:[#allocation2]] }
  0x22   : > { %s1696_s12 = sshll.u32 %s407_s29, 7  ;;  %s2608_s0 = sld [smem:[#allocation11_spill]] }
  0x23   : > { %s2017_s16 = sld [smem:[#allocation5]] }
  0x24   : > { %v2007_v3 = vstv %s1561_s24  ;;  %s2024_s22 = sld [smem:[#allocation2 + $0x2]] }
  0x25   : > { %v2010_v7 = vstv %s1562_s25  ;;  %s2038_s24 = sld [smem:[#allocation5 + $0x2]] }
  0x26   : > { %s2072_s25 = sld [smem:[#allocation2 + $0x3]] }
  0x27   : > { %v2022_v22 = vstv %s454_s30  ;;  %s2078_s29 = sld [smem:[#allocation5 + $0x3]] }
  0x28   : > { %s2002_s15 = scalar_lea.vmem %s2608_s0, %s1696_s12  ;;  %s2091_s30 = sld [smem:[#allocation2 + $0x4]] }
  0x29   : > { %v414_v0 = vld [vmem:[%s2002_s15 + $0x18] sm:$0x1]  ;;  %v413_v8 = vld [vmem:[%s2002_s15 + $0x10] sm:$0xff]  ;;  %v412_v16 = vld [vmem:[%s2002_s15 + $0x8] sm:$0xff]  ;;  %v469_v54 = vstv %s2017_s16  ;;  %s2116_s14 = sld [smem:[#allocation5 + $0x4]]  ;;  %s1458_s12 = scalar_lea.hbm %s2602_s11, %s1953_s21 }
  0x2a   : > { %v1552_v1 = vld [vmem:[%s2002_s15 + $0x38] sm:$0x1]  ;;  %v1551_v9 = vld [vmem:[%s2002_s15 + $0x30] sm:$0xff]  ;;  %v1550_v19 = vld [vmem:[%s2002_s15 + $0x28] sm:$0xff]  ;;  %v2070_v58 = vstv %s2024_s22  ;;  %s2132_s16 = sld [smem:[#allocation5 + $0x5]]  ;;  %s1462_s0 = sshll.u32 %s1458_s12, 4  ;;  %s1463_s0 = int_to_ptr.hbm [resolvable:$true] %s1462_s0 }
  0x2b   : > { %v1556_v2 = vld [vmem:[%s2002_s15 + $0x58] sm:$0x1]  ;;  %v433_v5 = vmax.f32 %v414_v0, %v1552_v1  ;;  %v445_v6 = vmin.f32 %v414_v0, %v1552_v1  ;;  %v1555_v12 = vld [vmem:[%s2002_s15 + $0x50] sm:$0xff]  ;;  %v432_v14 = vmax.f32 %v413_v8, %v1551_v9  ;;  %v444_v15 = vmin.f32 %v413_v8, %v1551_v9  ;;  %v1554_v20 = vld [vmem:[%s2002_s15 + $0x48] sm:$0xff] }
  0x2c   : > { %v1560_v4 = vld [vmem:[%s2002_s15 + $0x78] sm:$0x1]  ;;  %v1559_v13 = vld [vmem:[%s2002_s15 + $0x70] sm:$0xff]  ;;  %v1558_v21 = vld [vmem:[%s2002_s15 + $0x68] sm:$0xff]  ;;  %v431_v25 = vmax.f32 %v412_v16, %v1550_v19  ;;  %v443_v32 = vmin.f32 %v412_v16, %v1550_v19 }
  0x2d   : > { %v437_v10 = vmax.f32 %v1556_v2, %v1560_v4  ;;  %v449_v11 = vmin.f32 %v1556_v2, %v1560_v4  ;;  %v436_v17 = vmax.f32 %v1555_v12, %v1559_v13  ;;  %v448_v18 = vmin.f32 %v1555_v12, %v1559_v13  ;;  %v411_v27 = vld [vmem:[%s2002_s15] sm:$0xff] }
  0x2e   : > { %v435_v26 = vmax.f32 %v1554_v20, %v1558_v21  ;;  %v1549_v28 = vld [vmem:[%s2002_s15 + $0x20] sm:$0xff]  ;;  %v447_v33 = vmin.f32 %v1554_v20, %v1558_v21  ;;  %v2084_v2 = vstv %s2038_s24  ;;  %s1809_s24 = sshra.s32 %s1463_s0, 4  ;;  %s1810_s24 = int_to_ptr.hbm [resolvable:$true] %s1809_s24 }
  0x2f   : > { %v2026_v23 = vmax.f32 %v433_v5, %v437_v10  ;;  %v2028_v24 = vmin.f32 %v445_v6, %v449_v11  ;;  %v1553_v29 = vld [vmem:[%s2002_s15 + $0x40] sm:$0xff]  ;;  %v2033_v30 = vmax.f32 %v432_v14, %v436_v17  ;;  %v2035_v31 = vmin.f32 %v444_v15, %v448_v18  ;;  %s1811_s1 = scalar_lea.hbm %s1810_s24, 1  ;;  %p1816_p3 = scmp.lt.s32.totalorder %s1810_s24, %s2602_s11 }
  0x30   : > { %v1557_v34 = vld [vmem:[%s2002_s15 + $0x60] sm:$0xff]  ;;  %v2044_v37 = vmax.f32 %v431_v25, %v435_v26  ;;  %v430_v38 = vmax.f32 %v411_v27, %v1549_v28  ;;  %v2050_v41 = vmin.f32 %v443_v32, %v447_v33  ;;  %v442_v45 = vmin.f32 %v411_v27, %v1549_v28  ;;  %s2120_s15 = sld [smem:[#allocation2 + $0x5]]  ;;  %p1812_p0 = scmp.ne.s32.totalorder %s1810_s24, %s1811_s1 }
  0x31   : > { %v486_v35 = vmul.f32 %v2007_v3, %v2026_v23  ;;  %v490_v36 = vmul.f32 %v2007_v3, %v2028_v24  ;;  %v485_v39 = vmul.f32 %v2007_v3, %v2033_v30  ;;  %v489_v40 = vmul.f32 %v2007_v3, %v2035_v31 }
  0x32   : > { %v434_v42 = vmax.f32 %v1553_v29, %v1557_v34  ;;  %v484_v44 = vmul.f32 %v2007_v3, %v2044_v37  ;;  %v446_v46 = vmin.f32 %v1553_v29, %v1557_v34  ;;  %v488_v48 = vmul.f32 %v2007_v3, %v2050_v41  ;;  %p1813_p1 = pnand %p1812_p0, %p1970_p5 }
  0x33   : > { %v494_v43 = vmax.f32 %v486_v35, %v490_v36  ;;  %v493_v47 = vmax.f32 %v485_v39, %v489_v40  ;;  %v460_v50 = vmul.f32 %v2022_v22, %v2026_v23  ;;  %v464_v53 = vmul.f32 %v2022_v22, %v2028_v24 }
  0x34   : > { %v2056_v49 = vmax.f32 %v430_v38, %v434_v42  ;;  %v2061_v52 = vmin.f32 %v442_v45, %v446_v46  ;;  %v492_v56 = vmax.f32 %v484_v44, %v488_v48  ;;  %v579_v62 = vmul.f32 %v2070_v58, %v2026_v23  ;;  %p1814_p2 = pneg %p1813_p1 }
  0x35   : > { %v499_v51 = vadd.f32 %v2010_v7, %v494_v43  ;;  %v498_v55 = vadd.f32 %v2010_v7, %v493_v47  ;;  %v468_v61 = vmax.f32 %v460_v50, %v464_v53  ;;  %v583_v1 = vmul.f32 %v2070_v58, %v2028_v24  ;;  %v478_v53 = vld [vmem:[%s2594_s3] sm:$0xff] }
  0x36   : > { %v483_v57 = vmul.f32 %v2007_v3, %v2056_v49  ;;  %v487_v60 = vmul.f32 %v2007_v3, %v2061_v52  ;;  %v497_v0 = vadd.f32 %v2010_v7, %v492_v56  ;;  %v459_v3 = vmul.f32 %v2022_v22, %v2033_v30 }
  0x37   : > { %v503_v59 = vmax.f32 %v499_v51, 0.0  ;;  %v502_v63 = vmax.f32 %v498_v55, 0.0  ;;  %v473_v5 = vadd.f32 %v469_v54, %v468_v61  ;;  %v463_v6 = vmul.f32 %v2022_v22, %v2035_v31 }
  0x38   : > { %v491_v4 = vmax.f32 %v483_v57, %v487_v60  ;;  %v501_v8 = vmax.f32 %v497_v0, 0.0  ;;  %v587_v9 = vmax.f32 %v579_v62, %v583_v1  ;;  %v458_v10 = vmul.f32 %v2022_v22, %v2044_v37  ;;  %v479_v57 = vld [vmem:[%s2594_s3 + $0x8] sm:$0xff]  ;;  %v1564_v62 = vld [vmem:[%s2594_s3 + $0x18] sm:$0xff] }
  0x39   : > { %1565 = vmatpush.msk.msra.mxu2 %vm514_vm0, %v503_v59  ;;  %v462_v11 = vmul.f32 %v2022_v22, %v2050_v41  ;;  %v477_v13 = vmax.f32 %v473_v5, 0.0  ;;  %v467_v14 = vmax.f32 %v459_v3, %v463_v6  ;;  %v578_v15 = vmul.f32 %v2070_v58, %v2033_v30 }
  0x3a   : > { %v496_v12 = vadd.f32 %v2010_v7, %v491_v4  ;;  %v592_v16 = vadd.f32 %v2084_v2, %v587_v9  ;;  %v582_v18 = vmul.f32 %v2070_v58, %v2035_v31  ;;  %v457_v19 = vmul.f32 %v2022_v22, %v2056_v49  ;;  %v1563_v7 = vld [vmem:[%s2594_s3 + $0x10] sm:$0xff] }
  0x3b   : > { %531 = vmatpush.msra.mxu2 %v502_v63  ;;  %v466_v17 = vmax.f32 %v458_v10, %v462_v11  ;;  %1568 = vmatpush.msk.msra.mxu1 %vm514_vm0, %v477_v13  ;;  %v472_v21 = vadd.f32 %v469_v54, %v467_v14  ;;  %v461_v25 = vmul.f32 %v2022_v22, %v2061_v52  ;;  %v636_v35 = vstv %s2072_s25  ;;  %s404_s25 = sand.u32 1, %s1857_s18  }
  0x3c   : > { %v500_v20 = vmax.f32 %v496_v12, 0.0  ;;  %v577_v26 = vmul.f32 %v2070_v58, %v2044_v37  ;;  %v596_v27 = vmax.f32 %v592_v16, 0.0  ;;  %1697 = vmatpush.msk.msra.mxu3 %vm514_vm0, %v477_v13  ;;  %v586_v29 = vmax.f32 %v578_v15, %v582_v18  ;;  %s1450_s22 = scalar_lea.sflag [#allocation3], %s404_s25 }
  0x3d   : > { %532 = vmatpush.msra.mxu2 %v501_v8  ;;  %v471_v28 = vadd.f32 %v469_v54, %v466_v17  ;;  %v581_v32 = vmul.f32 %v2070_v58, %v2050_v41  ;;  %v476_v33 = vmax.f32 %v472_v21, 0.0  ;;  %v465_v34 = vmax.f32 %v457_v19, %v461_v25 }
  0x3e   : > { %v649_v36 = vstv %s2078_s29  ;;  %v591_v38 = vadd.f32 %v2084_v2, %v586_v29  ;;  %v640_v40 = vmul.f32 %v636_v35, %v2026_v23  ;;  %v644_v43 = vmul.f32 %v636_v35, %v2028_v24 }
  0x3f   : > { %533 = vmatpush.msra.mxu2 %v500_v20  ;;  %v475_v22 = vmax.f32 %v471_v28, 0.0  ;;  %v585_v39 = vmax.f32 %v577_v26, %v581_v32  ;;  %563 = vmatpush.msra.mxu1 %v476_v33  ;;  %v470_v42 = vadd.f32 %v469_v54, %v465_v34  ;;  %v576_v44 = vmul.f32 %v2070_v58, %v2056_v49  ;;  %v1573_v34 = vld [vmem:[%s2594_s3 + $0x20] sm:$0xff] }
  0x40   : > { %1566 = vmatmul.msk.f32.vlgmr.msra.gmra.mxu2 %vm507_vm1, %v1563_v7  ;;  %v2130_v45 = vstv %s2091_s30  ;;  %1698 = vmatpush.msra.mxu3 %v476_v33  ;;  %v595_v46 = vmax.f32 %v591_v38, 0.0  ;;  %v580_v48 = vmul.f32 %v2070_v58, %v2061_v52  ;;  %v639_v50 = vmul.f32 %v636_v35, %v2033_v30  ;;  %s1815_s30 = scalar_lea.hbm %s2602_s11, 2 }
  0x41   : > { %1575 = vmatpush.msk.msrb.mxu2 %vm514_vm0, %v596_v27  ;;  %v590_v47 = vadd.f32 %v2084_v2, %v585_v39  ;;  %564 = vmatpush.msra.mxu1 %v475_v22  ;;  %v474_v51 = vmax.f32 %v470_v42, 0.0  ;;  %v648_v54 = vmax.f32 %v640_v40, %v644_v43  ;;  %v643_v55 = vmul.f32 %v636_v35, %v2035_v31  ;;  %p1817_p4 = scmp.lt.s32.totalorder %s1815_s30, %s1811_s1 }
  0x42   : > { %v638_v56 = vmul.f32 %v636_v35, %v2044_v37  ;;  %1699 = vmatpush.msra.mxu3 %v475_v22  ;;  %v584_v59 = vmax.f32 %v576_v44, %v580_v48  ;;  %v642_v60 = vmul.f32 %v636_v35, %v2050_v41  ;;  %v637_v61 = vmul.f32 %v636_v35, %v2056_v49 }
  0x43   : > { %622 = vmatpush.msrb.mxu2 %v595_v46  ;;  %v594_v58 = vmax.f32 %v590_v47, 0.0  ;;  %565 = vmatpush.msra.mxu1 %v474_v51  ;;  %v653_v63 = vadd.f32 %v649_v36, %v648_v54  ;;  %v647_v0 = vmax.f32 %v639_v50, %v643_v55  ;;  %v641_v1 = vmul.f32 %v636_v35, %v2061_v52  ;;  %v1580_v35 = vld [vmem:[%s2594_s3 + $0x30] sm:$0xff]  ;;  %p1818_p7 = por %p1817_p4, %p1816_p3 }
  0x44   : > { %v701_v4 = vmul.f32 %v2130_v45, %v2026_v23  ;;  %1569 = vmatmul.msk.f32.vlgmr.msra.gmra.mxu1 %vm507_vm1, %v478_v53  ;;  %1700 = vmatpush.msra.mxu3 %v474_v51  ;;  %v589_v5 = vadd.f32 %v2084_v2, %v584_v59  ;;  %v646_v3 = vmax.f32 %v638_v56, %v642_v60  ;;  %v710_v8 = vstv %s2116_s14  ;;  %v817_v51 = vld [vmem:[%s2595_s4] sm:$0xff]  ;;  %v1574_v60 = vld [vmem:[%s2594_s3 + $0x28] sm:$0xff] }
  0x45   : > { %v705_v6 = vmul.f32 %v2130_v45, %v2028_v24  ;;  %1570 = vmatmul.msk.f32.vlgmr.msra.gmra.mxu3 %vm507_vm1, %v479_v57  ;;  %623 = vmatpush.msrb.mxu2 %v594_v58  ;;  %v657_v9 = vmax.f32 %v653_v63, 0.0  ;;  %v652_v10 = vadd.f32 %v649_v36, %v647_v0  ;;  %v645_v11 = vmax.f32 %v637_v61, %v641_v1  ;;  %v1581_v61 = vld [vmem:[%s2594_s3 + $0x38] sm:$0xff]  ;;  %v1594_v63 = vld [vmem:[%s2594_s3 + $0x50] sm:$0xff]  ;;  %v818_v0 = vld [vmem:[%s2595_s4 + $0x8] sm:$0xff]  ;;  %p1819_p8 = pnand %p1818_p7, %p1814_p2 }
  0x46   : > { %v758_v12 = vstv %s2120_s15  ;;  %v593_v13 = vmax.f32 %v589_v5, 0.0  ;;  %v651_v14 = vadd.f32 %v649_v36, %v646_v3  ;;  %v771_v19 = vstv %s2132_s16  ;;  %v1588_v1 = vld [vmem:[%s2594_s3 + $0x48] sm:$0xff]  ;;  %s1871_s16 = smov 78   ;;  %s405_s15 = scalar_lea.vmem [#allocation7], %s404_s25 }
  0x47   : > { %v709_v15 = vmax.f32 %v701_v4, %v705_v6  ;;  %v762_v2 = vmul.f32 %v758_v12, %v2026_v23  ;;  %1582 = vmatpush.msk.msrb.mxu3 %vm514_vm0, %v657_v9  ;;  %v656_v16 = vmax.f32 %v652_v10, 0.0  ;;  %v650_v17 = vadd.f32 %v649_v36, %v645_v11  ;;  %v1595_v4 = vld [vmem:[%s2594_s3 + $0x58] sm:$0xff] }
  0x48   : > { %1567 = vmatmul.msk.f32.gmra.mxu2 %vm507_vm1, %v1564_v62  ;;  %v766_v18 = vmul.f32 %v758_v12, %v2028_v24  ;;  %v655_v20 = vmax.f32 %v651_v14, 0.0  ;;  %v700_v21 = vmul.f32 %v2130_v45, %v2033_v30  ;;  %v704_v25 = vmul.f32 %v2130_v45, %v2035_v31 }
  0x49   : > { %624 = vmatpush.msrb.mxu2 %v593_v13  ;;  %v714_v7 = vadd.f32 %v710_v8, %v709_v15  ;;  %683 = vmatpush.msrb.mxu3 %v656_v16  ;;  %v654_v26 = vmax.f32 %v650_v17, 0.0  ;;  %v761_v23 = vmul.f32 %v758_v12, %v2033_v30  ;;  %v765_v28 = vmul.f32 %v758_v12, %v2035_v31 }
  0x4a   : > { %v770_v27 = vmax.f32 %v762_v2, %v766_v18  ;;  %v708_v32 = vmax.f32 %v700_v21, %v704_v25  ;;  %v699_v24 = vmul.f32 %v2130_v45, %v2044_v37  ;;  %v703_v33 = vmul.f32 %v2130_v45, %v2050_v41 }
  0x4b   : > { %v718_v29 = vmax.f32 %v714_v7, 0.0  ;;  %684 = vmatpush.msrb.mxu3 %v655_v20  ;;  %v769_v36 = vmax.f32 %v761_v23, %v765_v28  ;;  %v760_v31 = vmul.f32 %v758_v12, %v2044_v37  ;;  %v764_v22 = vmul.f32 %v758_v12, %v2050_v41 }
  0x4c   : > { %v775_v30 = vadd.f32 %v771_v19, %v770_v27  ;;  %v713_v38 = vadd.f32 %v710_v8, %v708_v32  ;;  %v707_v39 = vmax.f32 %v699_v24, %v703_v33  ;;  %v698_v40 = vmul.f32 %v2130_v45, %v2056_v49 }
  0x4d   : > { %1589 = vmatpush.msk.msra.mxu0 %vm514_vm0, %v718_v29  ;;  %v702_v42 = vmul.f32 %v2130_v45, %v2061_v52  ;;  %685 = vmatpush.msrb.mxu3 %v654_v26  ;;  %v774_v44 = vadd.f32 %v771_v19, %v769_v36  ;;  %v768_v46 = vmax.f32 %v760_v31, %v764_v22  ;;  %v1869_v56 = vmov 0   ;;  %v1603_v36 = vld [vmem:[%s2596_s5 + $0x30] sm:$0xff]  ;;  %v855_v31 = vld [vmem:[%s2596_s5 + $0x8] sm:$0xff] }
  0x4e   : > { %v779_v43 = vmax.f32 %v775_v30, 0.0  ;;  %v759_v47 = vmul.f32 %v758_v12, %v2056_v49  ;;  %1583 = vmatmul.msk.f32.vlgmr.msrb.gmra.mxu3 %vm507_vm1, %v1580_v35  ;;  %v717_v37 = vmax.f32 %v713_v38, 0.0  ;;  %v712_v41 = vadd.f32 %v710_v8, %v707_v39  ;;  %1764 = vset.pattern.permute.xlu0 %v1869_v56  ;;  %v1604_v35 = vld [vmem:[%s2596_s5 + $0x38] sm:$0x1]  ;;  %v856_v30 = vld [vmem:[%s2596_s5 + $0x10] sm:$0xff]  ;;  %v1602_v22 = vld [vmem:[%s2596_s5 + $0x28] sm:$0xff] }
  0x4f   : > { %v706_v48 = vmax.f32 %v698_v40, %v702_v42  ;;  %v763_v50 = vmul.f32 %v758_v12, %v2061_v52  ;;  %v778_v45 = vmax.f32 %v774_v44, 0.0  ;;  %v773_v53 = vadd.f32 %v771_v19, %v768_v46  ;;  %821 = vperm.xlu0 %1764, %v817_v51   ;;  %v1587_v52 = vld [vmem:[%s2594_s3 + $0x40] sm:$0xff]  ;;  %1605 = vmatpush.msk.msra.mxu3 %vm514_vm0, %v1604_v35  ;;  %v1622_v38 = vld [vmem:[%s2596_s5 + $0x98] sm:$0x1]  ;;  %v1621_v40 = vld [vmem:[%s2596_s5 + $0x90] sm:$0xff] }
  0x50   : > { %1576 = vmatmul.msk.f32.vlgmr.msrb.gmra.mxu2 %vm507_vm1, %v1573_v34  ;;  %1596 = vmatpush.msk.msrb.mxu1 %vm514_vm0, %v779_v43  ;;  %v716_v54 = vmax.f32 %v712_v41, 0.0  ;;  %v857_v34 = vld [vmem:[%s2596_s5 + $0x18] sm:$0x1]  ;;  %v1627_v42 = vld [vmem:[%s2596_s5 + $0xb0] sm:$0xff]  ;;  %v854_v43 = vld [vmem:[%s2596_s5] sm:$0xff] }
  0x51   : > { %744 = vmatpush.msra.mxu0 %v717_v37  ;;  %v711_v49 = vadd.f32 %v710_v8, %v706_v48  ;;  %v767_v55 = vmax.f32 %v759_v47, %v763_v50  ;;  %v777_v57 = vmax.f32 %v773_v53, 0.0  ;;  %1599 = vmatpush.msk.msra.mxu2 %vm514_vm0, %v857_v34  ;;  %v1628_v39 = vld [vmem:[%s2596_s5 + $0xb8] sm:$0x1]  ;;  %v1601_v41 = vld [vmem:[%s2596_s5 + $0x20] sm:$0xff]  ;;  %v1620_v48 = vld [vmem:[%s2596_s5 + $0x88] sm:$0xff] }
  0x52   : > { %805 = vmatpush.msrb.mxu1 %v778_v45  ;;  %909 = vmatpush.msra.mxu3 %v1603_v36  ;;  %v1626_v50 = vld [vmem:[%s2596_s5 + $0xa8] sm:$0xff]  ;;  %v1610_v51 = vld [vmem:[%s2596_s5 + $0x58] sm:$0x1]  ;;  %v1619_v45 = vld [vmem:[%s2596_s5 + $0x80] sm:$0xff] }
  0x53   : > { %745 = vmatpush.msra.mxu0 %v716_v54  ;;  %v715_v58 = vmax.f32 %v711_v49, 0.0  ;;  %v772_v59 = vadd.f32 %v771_v19, %v767_v55  ;;  %877 = vmatpush.msra.mxu2 %v856_v30  ;;  %v1625_v53 = vld [vmem:[%s2596_s5 + $0xa0] sm:$0xff]  ;;  %v1609_v54 = vld [vmem:[%s2596_s5 + $0x50] sm:$0xff]  ;;  %v1616_v49 = vld [vmem:[%s2596_s5 + $0x78] sm:$0x1] }
  0x54   : > { %806 = vmatpush.msrb.mxu1 %v777_v57  ;;  %910 = vmatpush.msra.mxu3 %v1602_v22  ;;  %v1646_v55 = vld [vmem:[%s2596_s5 + $0x118] sm:$0x1]  ;;  %v1608_v57 = vld [vmem:[%s2596_s5 + $0x48] sm:$0xff]  ;;  %v1657_v34 = vld [vmem:[%s2596_s5 + $0x150] sm:$0xff] }
  0x55   : > { %746 = vmatpush.msra.mxu0 %v715_v58  ;;  %v776_v62 = vmax.f32 %v772_v59, 0.0  ;;  %878 = vmatpush.msra.mxu2 %v855_v31  ;;  %v1652_v56 = vld [vmem:[%s2596_s5 + $0x138] sm:$0x1]  ;;  %v1615_v58 = vld [vmem:[%s2596_s5 + $0x70] sm:$0xff]  ;;  %v1656_v36 = vld [vmem:[%s2596_s5 + $0x148] sm:$0xff] }
  0x56   : > { %1590 = vmatmul.msk.f32.vlgmr.msra.gmra.mxu0 %vm507_vm1, %v1587_v52  ;;  %1584 = vmatmul.msk.f32.gmra.mxu3 %vm507_vm1, %v1581_v61  ;;  %v1645_v52 = vld [vmem:[%s2596_s5 + $0x110] sm:$0xff]  ;;  %v1614_v61 = vld [vmem:[%s2596_s5 + $0x68] sm:$0xff] }
  0x57   : > { %807 = vmatpush.msrb.mxu1 %v776_v62  ;;  %826 = vperm.xlu0 %1764, %v818_v0   ;;  %v1651_v59 = vld [vmem:[%s2596_s5 + $0x130] sm:$0xff]  ;;  %v1644_v62 = vld [vmem:[%s2596_s5 + $0x108] sm:$0xff]  ;;  %v1613_v0 = vld [vmem:[%s2596_s5 + $0x60] sm:$0xff] }
  0x58   : > { %1577 = vmatmul.msk.f32.gmra.mxu2 %vm507_vm1, %v1574_v60  ;;  %1597 = vmatmul.msk.f32.vlgmr.msrb.gmra.mxu1 %vm507_vm1, %v1594_v63  ;;  %v1607_v60 = vld [vmem:[%s2596_s5 + $0x40] sm:$0xff]  ;;  %v1650_v63 = vld [vmem:[%s2596_s5 + $0x128] sm:$0xff]  ;;  %v1663_v35 = vld [vmem:[%s2596_s5 + $0x170] sm:$0xff] }
  0x59   : > { %1623 = vmatpush.msk.msrb.mxu0 %vm514_vm0, %v1622_v38  ;;  %1629 = vmatpush.msk.msra.mxu1 %vm514_vm0, %v1628_v39  ;;  %v1662_v31 = vld [vmem:[%s2596_s5 + $0x168] sm:$0xff]  ;;  %v1655_v39 = vld [vmem:[%s2596_s5 + $0x140] sm:$0xff] }
  0x5a   : > { %879 = vmatpush.msra.mxu2 %v854_v43  ;;  %911 = vmatpush.msra.mxu3 %v1601_v41  ;;  %v1682_v43 = vld [vmem:[%s2596_s5 + $0x1d8] sm:$0x1]  ;;  %v1680_v41 = vld [vmem:[%s2596_s5 + $0x1c8] sm:$0xff] }
  0x5b   : > { %1005 = vmatpush.msrb.mxu0 %v1621_v40  ;;  %1037 = vmatpush.msra.mxu1 %v1627_v42  ;;  %v1661_v42 = vld [vmem:[%s2596_s5 + $0x160] sm:$0xff] }
  0x5c   : > { %1611 = vmatpush.msk.msrb.mxu2 %vm514_vm0, %v1610_v51  ;;  %1617 = vmatpush.msk.msrb.mxu3 %vm514_vm0, %v1616_v49  ;;  %v1679_v51 = vld [vmem:[%s2596_s5 + $0x1c0] sm:$0xff]  ;;  %v1380_v49 = vld [vmem:[%s2598_s7 + $0x70] sm:$0xff] }
  0x5d   : > { %1006 = vmatpush.msrb.mxu0 %v1620_v48  ;;  %1038 = vmatpush.msra.mxu1 %v1626_v50  ;;  %v1686_v48 = vld [vmem:[%s2596_s5 + $0x1e8] sm:$0xff] }
  0x5e   : > { %1591 = vmatmul.msk.f32.gmra.mxu0 %vm507_vm1, %v1588_v1  ;;  %941 = vmatpush.msrb.mxu2 %v1609_v54  ;;  %v1643_v1 = vld [vmem:[%s2596_s5 + $0x100] sm:$0xff] }
  0x5f   : > { %1007 = vmatpush.msrb.mxu0 %v1619_v45  ;;  %1039 = vmatpush.msra.mxu1 %v1625_v53  ;;  %v1685_v45 = vld [vmem:[%s2596_s5 + $0x1e0] sm:$0xff] }
  0x60   : > { %1598 = vmatmul.msk.f32.gmra.mxu1 %vm507_vm1, %v1595_v4  ;;  %942 = vmatpush.msrb.mxu2 %v1608_v57  ;;  %v1649_v4 = vld [vmem:[%s2596_s5 + $0x120] sm:$0xff]  ;;  %v1377_v57 = vld [vmem:[%s2598_s7 + $0x58] sm:$0xff] }
  0x61   : > { %1647 = vmatpush.msk.msra.mxu0 %vm514_vm0, %v1646_v55  ;;  %1653 = vmatpush.msk.msrb.mxu1 %vm514_vm0, %v1652_v56  ;;  %v1379_v55 = vld [vmem:[%s2598_s7 + $0x68] sm:$0xff]  ;;  %v1378_v56 = vld [vmem:[%s2598_s7 + $0x60] sm:$0xff] }
  0x62   : > { %973 = vmatpush.msrb.mxu3 %v1615_v58  ;;  %943 = vmatpush.msrb.mxu2 %v1607_v60  ;;  %v1376_v58 = vld [vmem:[%s2598_s7 + $0x50] sm:$0xff]  ;;  %v1373_v60 = vld [vmem:[%s2598_s7 + $0x38] sm:$0xff] }
  0x63   : > { %1133 = vmatpush.msra.mxu0 %v1645_v52  ;;  %1165 = vmatpush.msrb.mxu1 %v1651_v59  ;;  %v1375_v52 = vld [vmem:[%s2598_s7 + $0x48] sm:$0xff]  ;;  %v1374_v59 = vld [vmem:[%s2598_s7 + $0x40] sm:$0xff] }
  0x64   : > { %974 = vmatpush.msrb.mxu3 %v1614_v61  ;;  %v1372_v61 = vld [vmem:[%s2598_s7 + $0x30] sm:$0xff] }
  0x65   : > { %1134 = vmatpush.msra.mxu0 %v1644_v62  ;;  %1166 = vmatpush.msrb.mxu1 %v1650_v63  ;;  %v1371_v62 = vld [vmem:[%s2598_s7 + $0x28] sm:$0xff]  ;;  %v1370_v63 = vld [vmem:[%s2598_s7 + $0x20] sm:$0xff] }
  0x66   : > { %975 = vmatpush.msrb.mxu3 %v1613_v0  ;;  %v853_v0 = vld [vmem:[%s2597_s6] sm:$0x1] }
  0x67   : > { %1135 = vmatpush.msra.mxu0 %v1643_v1  ;;  %1167 = vmatpush.msrb.mxu1 %v1649_v4  ;;  %v1369_v4 = vld [vmem:[%s2598_s7 + $0x18] sm:$0xff] }
  0xc1   : > { %v567_v8 = vpop.f32.mrf.mxu1  ;;  %v822_v16 = vpop.permute.xlu0 %821 }
  0xc3   : > { %v535_v5 = vpop.f32.mrf.mxu2 }
  0xc4   : > { %v568_v9 = vadd.f32 %v567_v8, %v535_v5 }
  0xc8   : > { %v570_v6 = vpop.f32.mrf.mxu3 }
  0xc9   : > { %v827_v32 = vpop.permute.xlu0 %826 }
  0xcb   : > { %v538_v3 = vpop.f32.mrf.mxu2 }
  0xcc   : > { %v571_v17 = vadd.f32 %v570_v6, %v538_v3  ;;  %v1634_v6 = vld [vmem:[%s2596_s5 + $0xd8] sm:$0x1] }
  0xd1   : > { %v687_v11 = vpop.f32.mrf.mxu3 }
  0xd3   : > { %v626_v10 = vpop.f32.mrf.mxu2  ;;  %v748_v13 = vpop.f32.mrf.mxu0 }
  0xd4   : > { %v632_v12 = vadd.f32 %v626_v10, %v568_v9 }
  0xd5   : > { %v809_v15 = vpop.f32.mrf.mxu1 }
  0xd6   : > { %v693_v14 = vadd.f32 %v687_v11, %v632_v12  ;;  %v1633_v11 = vld [vmem:[%s2596_s5 + $0xd0] sm:$0xff]  ;;  %v1640_v12 = vld [vmem:[%s2596_s5 + $0xf8] sm:$0x1] }
  0xd8   : > { %v754_v2 = vadd.f32 %v748_v13, %v693_v14  ;;  %v1670_v13 = vld [vmem:[%s2596_s5 + $0x198] sm:$0x1] }
  0xd9   : > { %v690_v20 = vpop.f32.mrf.mxu3  ;;  %v1676_v14 = vld [vmem:[%s2596_s5 + $0x1b8] sm:$0x1] }
  0xda   : > { %v815_v18 = vadd.f32 %v809_v15, %v754_v2  ;;  %v1632_v15 = vld [vmem:[%s2596_s5 + $0xc8] sm:$0xff]  ;;  %v1639_v2 = vld [vmem:[%s2596_s5 + $0xf0] sm:$0xff] }
  0xdb   : > { %v629_v19 = vpop.f32.mrf.mxu2  ;;  %v751_v25 = vpop.f32.mrf.mxu0 }
  0xdc   : > { %v633_v7 = vadd.f32 %v629_v19, %v571_v17  ;;  %v829_v21 = vadd.f32 %v822_v16, %v815_v18  ;;  %v1669_v16 = vld [vmem:[%s2596_s5 + $0x190] sm:$0xff]  ;;  %v1631_v18 = vld [vmem:[%s2596_s5 + $0xc0] sm:$0xff] }
  0xdd   : > { %v812_v23 = vpop.f32.mrf.mxu1  ;;  %v1675_v17 = vld [vmem:[%s2596_s5 + $0x1b0] sm:$0xff] }
  0xde   : > { %v694_v26 = vadd.f32 %v690_v20, %v633_v7  ;;  %v831_v27 = vmax.f32 %v829_v21, 0.0  ;;  %v1638_v20 = vld [vmem:[%s2596_s5 + $0xe8] sm:$0xff] }
  0xe0   : > { %v755_v28 = vadd.f32 %v751_v25, %v694_v26  ;;  %835 = vrot.lane.b32.xlu1 %v831_v27, %s1870_s13  ;;  %v1668_v25 = vld [vmem:[%s2596_s5 + $0x188] sm:$0xff] }
  0xe1   : > { %v1674_v26 = vld [vmem:[%s2596_s5 + $0x1a8] sm:$0xff] }
  0xe2   : > { %v816_v29 = vadd.f32 %v812_v23, %v755_v28  ;;  %v1637_v28 = vld [vmem:[%s2596_s5 + $0xe0] sm:$0xff] }
  0xe4   : > { %v830_v24 = vadd.f32 %v827_v32, %v816_v29  ;;  %v1658_v29 = vld [vmem:[%s2596_s5 + $0x158] sm:$0x1]  ;;  %v1667_v32 = vld [vmem:[%s2596_s5 + $0x180] sm:$0xff] }
  0xe6   : > { %v832_v33 = vmax.f32 %v830_v24, 0.0  ;;  %v1673_v24 = vld [vmem:[%s2596_s5 + $0x1a0] sm:$0xff] }
  0xe8   : > { %837 = vrot.lane.b32.xlu1 %v832_v33, %s1870_s13 }
 0x152   : > { %v836_v44 = vpop.permute.xlu1 %835 }
 0x153   : > { %v841_v46 = vmax.f32 %v831_v27, %v836_v44  ;;  %v1688_v44 = vld [vmem:[%s2596_s5 + $0x1f8] sm:$0x1] }
 0x155   : > { %845 = vrot.lane.b32.xlu2 %v841_v46, %s1871_s16 }
 0x15a   : > { %v838_v47 = vpop.permute.xlu1 %837 }
 0x15b   : > { %v2261_v37 = vmax.f32 %v832_v33, %v838_v47  ;;  %v1664_v33 = vld [vmem:[%s2596_s5 + $0x178] sm:$0x1]  ;;  %v1687_v47 = vld [vmem:[%s2596_s5 + $0x1f0] sm:$0xff] }
 0x15d   : > { %847 = vrot.lane.b32.xlu2 %v2261_v37, %s1871_s16  ;;  %s1460_s16 = sshll.u32 %s405_s15, 4  ;;  %s1461_s16 = int_to_ptr.vmem [resolvable:$true] %s1460_s16 }
 0x1af   : > { %v846_v5 = vpop.permute.xlu2 %845 }
 0x1b0   : > { %v2331_v3 = vmax.f32 %v841_v46, %v846_v5  ;;  %v1681_v46 = vld [vmem:[%s2596_s5 + $0x1d0] sm:$0xff] }
 0x1b2   : > { %1600 = vmatmul.msk.f32.vlgmr.msra.gmra.mxu2 %vm507_vm1, %v2331_v3  ;;  %v890_v8 = vrot.slane %v2331_v3, 1  ;;  %v986_v9 = vrot.slane %v2331_v3, 4  ;;  %v1018_v10 = vrot.slane %v2331_v3, 5  ;;  %v922_v21 = vrot.slane %v2331_v3, 2 }
 0x1b3   : > { %1635 = vmatpush.msk.msra.mxu2 %vm514_vm0, %v1634_v6  ;;  %v954_v27 = vrot.slane %v2331_v3, 3  ;;  %v1050_v30 = vrot.slane %v2331_v3, 6  ;;  %v1082_v22 = vrot.slane %v2331_v3, 7  ;;  %v1368_v3 = vld [vmem:[%s2598_s7 + $0x10] sm:$0xff] }
 0x1b4   : > { %1606 = vmatmul.msk.f32.vlgmr.msra.gmra.mxu3 %vm507_vm1, %v890_v8  ;;  %1624 = vmatmul.msk.f32.vlgmr.msrb.gmra.mxu0 %vm507_vm1, %v986_v9  ;;  %v1367_v8 = vld [vmem:[%s2598_s7 + $0x8] sm:$0xff]  ;;  %v1366_v9 = vld [vmem:[%s2598_s7] sm:$0xff] }
 0x1b5   : > { %1630 = vmatmul.msk.f32.vlgmr.msra.gmra.mxu1 %vm507_vm1, %v1018_v10  ;;  %1069 = vmatpush.msra.mxu2 %v1633_v11  ;;  %v1417_v11 = vld [vmem:[%s2600_s9 + $0x50] sm:$0xf] }
 0x1b6   : > { %1641 = vmatpush.msk.msra.mxu3 %vm514_vm0, %v1640_v12  ;;  %1671 = vmatpush.msk.msrb.mxu0 %vm514_vm0, %v1670_v13  ;;  %v1416_v12 = vld [vmem:[%s2600_s9 + $0x48] sm:$0xff] }
 0x1b7   : > { %v848_v19 = vpop.permute.xlu2 %847  ;;  %1677 = vmatpush.msk.msra.mxu1 %vm514_vm0, %v1676_v14  ;;  %1070 = vmatpush.msra.mxu2 %v1632_v15 }
 0x1b8   : > { %v2379_v7 = vmax.f32 %v2261_v37, %v848_v19  ;;  %1101 = vmatpush.msra.mxu3 %v1639_v2  ;;  %1261 = vmatpush.msrb.mxu0 %v1669_v16  ;;  %v1415_v2 = vld [vmem:[%s2600_s9 + $0x40] sm:$0xff]  ;;  %v1414_v19 = vld [vmem:[%s2600_s9 + $0x38] sm:$0xff] }
 0x1b9   : > { %1293 = vmatpush.msra.mxu1 %v1675_v17  ;;  %1071 = vmatpush.msra.mxu2 %v1631_v18 }
 0x1ba   : > { %1612 = vmatmul.msk.f32.vlgmr.msrb.gmra.mxu2 %vm507_vm1, %v922_v21  ;;  %v1146_v23 = vrot.slane %v2379_v7, 1  ;;  %1102 = vmatpush.msra.mxu3 %v1638_v20  ;;  %v1242_v38 = vrot.slane %v2379_v7, 4  ;;  %v1274_v40 = vrot.slane %v2379_v7, 5  ;;  %v1178_v37 = vrot.slane %v2379_v7, 2 }
 0x1bb   : > { %1262 = vmatpush.msrb.mxu0 %v1668_v25  ;;  %1294 = vmatpush.msra.mxu1 %v1674_v26  ;;  %v1210_v50 = vrot.slane %v2379_v7, 3  ;;  %v1306_v53 = vrot.slane %v2379_v7, 6  ;;  %v1338_v54 = vrot.slane %v2379_v7, 7  ;;  %v1412_v25 = vld [vmem:[%s2600_s9 + $0x28] sm:$0xff] }
 0x1bc   : > { %1618 = vmatmul.msk.f32.vlgmr.msrb.gmra.mxu3 %vm507_vm1, %v954_v27  ;;  %1648 = vmatmul.msk.f32.vlgmr.msra.gmra.mxu0 %vm507_vm1, %v2379_v7  ;;  %v1413_v7 = vld [vmem:[%s2600_s9 + $0x30] sm:$0xff] }
 0x1bd   : > { %1654 = vmatmul.msk.f32.vlgmr.msrb.gmra.mxu1 %vm507_vm1, %v1146_v23  ;;  %1103 = vmatpush.msra.mxu3 %v1637_v28  ;;  %v1411_v23 = vld [vmem:[%s2600_s9 + $0x20] sm:$0xff] }
 0x1be   : > { %1659 = vmatpush.msk.msrb.mxu2 %vm514_vm0, %v1658_v29  ;;  %1263 = vmatpush.msrb.mxu0 %v1667_v32 }
 0x1bf   : > { %1295 = vmatpush.msra.mxu1 %v1673_v24  ;;  %1665 = vmatpush.msk.msrb.mxu3 %vm514_vm0, %v1664_v33  ;;  %v1410_v24 = vld [vmem:[%s2600_s9 + $0x18] sm:$0xff] }
 0x1c0   : > { %1197 = vmatpush.msrb.mxu2 %v1657_v34  ;;  %1387 = vmatpush.msra.mxu0 %v1380_v49  ;;  %v1418_v49 = vld [vmem:[%s2601_s10] sm:$0x1] }
 0x1c1   : > { %1229 = vmatpush.msrb.mxu3 %v1663_v35  ;;  %1692 = vmatpush.msk.msrb.mxu1 %vm1423_vm2, %v1417_v11 }
 0x1c2   : > { %1636 = vmatmul.msk.f32.vlgmr.msra.gmra.mxu2 %vm507_vm1, %v1050_v30  ;;  %1388 = vmatpush.msra.mxu0 %v1379_v55 }
 0x1c3   : > { %1198 = vmatpush.msrb.mxu2 %v1656_v36  ;;  %1230 = vmatpush.msrb.mxu3 %v1662_v31 }
 0x1c4   : > { %1642 = vmatmul.msk.f32.vlgmr.msra.gmra.mxu3 %vm507_vm1, %v1082_v22  ;;  %1672 = vmatmul.msk.f32.vlgmr.msrb.gmra.mxu0 %vm507_vm1, %v1242_v38 }
 0x1c5   : > { %1678 = vmatmul.msk.f32.vlgmr.msra.gmra.mxu1 %vm507_vm1, %v1274_v40  ;;  %1199 = vmatpush.msrb.mxu2 %v1655_v39 }
 0x1c6   : > { %1231 = vmatpush.msrb.mxu3 %v1661_v42  ;;  %1389 = vmatpush.msra.mxu0 %v1378_v56 }
 0x1c7   : > { %1683 = vmatpush.msk.msra.mxu2 %vm514_vm0, %v1682_v43  ;;  %1433 = vmatpush.msrb.mxu1 %v1416_v12 }
 0x1c8   : > { %1689 = vmatpush.msk.msra.mxu3 %vm514_vm0, %v1688_v44  ;;  %1390 = vmatpush.msra.mxu0 %v1377_v57 }
 0x1c9   : > { %1325 = vmatpush.msra.mxu2 %v1681_v46  ;;  %1434 = vmatpush.msrb.mxu1 %v1415_v2 }
 0x1ca   : > { %1357 = vmatpush.msra.mxu3 %v1687_v47  ;;  %1660 = vmatmul.msk.f32.vlgmr.msrb.gmra.mxu2 %vm507_vm1, %v1178_v37 }
 0x1cb   : > { %1326 = vmatpush.msra.mxu2 %v1680_v41  ;;  %1391 = vmatpush.msra.mxu0 %v1376_v58  ;;  %v1409_v41 = vld [vmem:[%s2600_s9 + $0x10] sm:$0xff] }
 0x1cc   : > { %1358 = vmatpush.msra.mxu3 %v1686_v48  ;;  %1435 = vmatpush.msrb.mxu1 %v1414_v19  ;;  %v1408_v48 = vld [vmem:[%s2600_s9 + $0x8] sm:$0xff] }
 0x1cd   : > { %1666 = vmatmul.msk.f32.vlgmr.msrb.gmra.mxu3 %vm507_vm1, %v1210_v50  ;;  %1327 = vmatpush.msra.mxu2 %v1679_v51  ;;  %v1407_v50 = vld [vmem:[%s2600_s9] sm:$0xff] }
 0x1ce   : > { %1359 = vmatpush.msra.mxu3 %v1685_v45  ;;  %1392 = vmatpush.msra.mxu0 %v1375_v52  ;;  %v1381_v51 = vld [vmem:[%s2599_s8] sm:$0x1] }
 0x1cf   : > { %1436 = vmatpush.msrb.mxu1 %v1413_v7 }
 0x1d0   : > { %1393 = vmatpush.msra.mxu0 %v1374_v59 }
 0x1d1   : > { %1437 = vmatpush.msrb.mxu1 %v1412_v25 }
 0x1d2   : > { %1684 = vmatmul.msk.f32.vlgmr.msra.gmra.mxu2 %vm507_vm1, %v1306_v53  ;;  %1394 = vmatpush.msra.mxu0 %v1373_v60 }
 0x1d3   : > { %1438 = vmatpush.msrb.mxu1 %v1411_v23 }
 0x1d4   : > { %1395 = vmatpush.msra.mxu0 %v1372_v61 }
 0x1d5   : > { %1690 = vmatmul.msk.f32.vlgmr.msra.gmra.mxu3 %vm507_vm1, %v1338_v54  ;;  %1439 = vmatpush.msrb.mxu1 %v1410_v24 }
 0x1d6   : > { %1396 = vmatpush.msra.mxu0 %v1371_v62 }
 0x1d7   : > { %1440 = vmatpush.msrb.mxu1 %v1409_v41 }
 0x1d8   : > { %1397 = vmatpush.msra.mxu0 %v1370_v63 }
 0x1d9   : > { %1441 = vmatpush.msrb.mxu1 %v1408_v48 }
 0x1da   : > { %1398 = vmatpush.msra.mxu0 %v1369_v4 }
 0x1db   : > { %1442 = vmatpush.msrb.mxu1 %v1407_v50 }
 0x1dc   : > { %1399 = vmatpush.msra.mxu0 %v1368_v3 }
 0x1de   : > { %1400 = vmatpush.msra.mxu0 %v1367_v8 }
 0x1e0   : > { %1401 = vmatpush.msra.mxu0 %v1366_v9 }
 0x231   : > { %v1009_v13 = vpop.f32.mrf.mxu0 }
 0x232   : > { %v1041_v16 = vpop.f32.mrf.mxu1 }
 0x235   : > { %v881_v1 = vpop.f32.mrf.mxu2 }
 0x236   : > { %v884_v6 = vadd.f32 %v881_v1, %v853_v0 }
 0x237   : > { %v913_v5 = vpop.f32.mrf.mxu3 }
 0x238   : > { %v916_v10 = vadd.f32 %v913_v5, %v884_v6 }
 0x239   : > { %v1137_v28 = vpop.f32.mrf.mxu0 }
 0x23a   : > { %v1169_v33 = vpop.f32.mrf.mxu1 }
 0x23d   : > { %v945_v14 = vpop.f32.mrf.mxu2 }
 0x23e   : > { %v948_v15 = vadd.f32 %v945_v14, %v916_v10 }
 0x23f   : > { %v977_v17 = vpop.f32.mrf.mxu3 }
 0x240   : > { %v980_v18 = vadd.f32 %v977_v17, %v948_v15 }
 0x241   : > { %v1265_v38 = vpop.f32.mrf.mxu0 }
 0x242   : > { %v1012_v20 = vadd.f32 %v1009_v13, %v980_v18  ;;  %v1297_v40 = vpop.f32.mrf.mxu1 }
 0x244   : > { %v1044_v21 = vadd.f32 %v1041_v16, %v1012_v20 }
 0x245   : > { %v1073_v26 = vpop.f32.mrf.mxu2 }
 0x246   : > { %v1076_v27 = vadd.f32 %v1073_v26, %v1044_v21 }
 0x247   : > { %v1105_v29 = vpop.f32.mrf.mxu3 }
 0x248   : > { %v1108_v32 = vadd.f32 %v1105_v29, %v1076_v27 }
 0x24a   : > { %v1140_v34 = vadd.f32 %v1137_v28, %v1108_v32 }
 0x24c   : > { %v1172_v35 = vadd.f32 %v1169_v33, %v1140_v34 }
 0x24d   : > { %v1201_v30 = vpop.f32.mrf.mxu2 }
 0x24e   : > { %v1204_v36 = vadd.f32 %v1201_v30, %v1172_v35 }
 0x250   : > { %v1233_v31 = vpop.f32.mrf.mxu3 }
 0x251   : > { %v1236_v22 = vadd.f32 %v1233_v31, %v1204_v36 }
 0x253   : > { %v1268_v39 = vadd.f32 %v1265_v38, %v1236_v22 }
 0x255   : > { %v1300_v42 = vadd.f32 %v1297_v40, %v1268_v39  ;;  %v1329_v43 = vpop.f32.mrf.mxu2 }
 0x257   : > { %v1332_v44 = vadd.f32 %v1329_v43, %v1300_v42 }
 0x258   : > { %v1361_v46 = vpop.f32.mrf.mxu3 }
 0x259   : > { %v1364_v47 = vadd.f32 %v1361_v46, %v1332_v44 }
 0x25b   : > { %v1365_v37 = vmax.f32 %v1364_v47, 0.0 }
 0x25d   : > { %1691 = vmatmul.msk.f32.vlgmr.msra.gmra.mxu0 %vm1382_vm3, %v1365_v37 }
 0x2da   : > { %v1403_v45 = vpop.f32.mrf.mxu0 }
 0x2db   : > { %v1404_v53 = vadd.f32 %v1403_v45, %v1381_v51 }
 0x2dd   : > { %v1406_v54 = vmax.f32 %v1404_v53, 0.0 }
 0x2df   : > { %1693 = vmatmul.msk.f32.vlgmr.msrb.gmra.mxu1 %vm1419_vm4, %v1406_v54 }
 0x35c   : > { %v1444_v55 = vpop.f32.mrf.mxu1 }
 0x35d   : > { %v1445_v56 = vadd.f32 %v1444_v55, %v1418_v49 }
 0x35f   : > { %1448 = vst.msk [vmem:[%s405_s15] sm:$0x1] %vm1447_vm5, %v1445_v56 }
 0x360   : > { %1822 = shalt.err (!%p1819_p8)
}
 0x361   : > { %1709 = dma.vmem_to_hbm [thread:$0]  (%p1970_p5), %s1461_s16, 16, %s1463_s0, %s1450_s22  }
 0x362 PF: > { %p1726_p9 = scmp.ge.s32.totalorder %s1865_s20, 2  ;;  %s1474_s25 = sand.u32 1, %s1853_s17  }
 0x363   : > { %s1475_s14 = scalar_lea.sflag [#allocation3], %s1474_s25 }
 0x364   : > { %p1719_p10 = pnand %p1726_p9, %p1974_p6 }
 0x366   : > { %p1720_p11 = pneg %p1719_p10 }
 0x368   : > { %1848 = dma.done.wait (%p1720_p11), %s1475_s14, 16  }
 0x369   : > { %1850 = vsyncadd (%p1720_p11), %s1475_s14, 4294967280  ;;  %p23_p12 = scmp.ge.s32.totalorder %s1957_s23, 4   ;;  %s2609_s17 = smov %s1857_s18 }
 0x36a   : > { %s2610_s18 = smov %s1861_s19  ;;  %s2611_s19 = smov %s1968_s26 }
 0x36b   : > { %s2612_s20 = smov %s1957_s23  ;;  %25 = sbr.rel (!%p23_p12) target bundleno = 8 (0x8), region = 131 }
 0x370   :  { %1480 = vsyncpa [#allocation3], 1 }
 0x371   :  { %1482 = vsyncpa [#allocation3 + $0x1], 1 }
 0x372   :  { %1483 = vsyncpa [#allocation4], 1 }
 0x373   :  { %1485 = vsyncpa [#allocation4 + $0x1], 1 }
 0x374   :  { %1486 = vsyncpa [#allocation6], 1 }

</bundles_post_ra>
